<compile_context>
chip_gen: v7x
topology: tpu7x:2x2x1
jax: 0.10.0
libtpu: 0.0.40
codegen_flags: <defaults>
</compile_context>

<pallas_src>
import jax
import jax.numpy as jnp
from jax.experimental import pallas as pl
from jax.experimental.pallas import tpu as pltpu

IN_DIM = 28 * 28   # 784
HID = 200
OUT_DIM = 10

# Lane-padded dims (multiples of 128): dense MXU tiles, unmasked output stores.
IN_PAD = 896       # 784 -> 7 * 128 (padded in-kernel, in VMEM scratch)
HID_PAD = 256      # 200 -> 2 * 128
OUT_PAD = 128      # 10  -> 128


def _mlp_kernel(x_ref, w1_ref, b1_ref, w2_ref, b2_ref, w3_ref, b3_ref,
                o_ref, xs_ref):
    # K-pad x (784 -> 896) into the bf16 VMEM scratch so every matmul tile is a
    # dense lane multiple.  Re-zero the 112 pad lanes every step (cheap, ~16
    # masked vreg stores) so this stays correct when the "parallel" batch axis
    # is sharded across TensorCores (program_id 0 may never run on core 1).
    xs_ref[:, IN_DIM:] = jnp.zeros((xs_ref.shape[0], IN_PAD - IN_DIM), jnp.bfloat16)
    # f32 -> bf16 cast in-kernel (VPU cast is free relative to the x DMA).
    xs_ref[:, :IN_DIM] = x_ref[...].astype(jnp.bfloat16)

    # bf16 operands -> MXU with f32 accumulation; bias add + ReLU stay on the
    # f32 accumulator (VPU), re-cast to bf16 only to feed the next matmul.
    x = xs_ref[...]
    h1 = jnp.dot(x, w1_ref[...], preferred_element_type=jnp.float32) + b1_ref[...]
    h1 = jnp.maximum(h1, 0.0).astype(jnp.bfloat16)
    h2 = jnp.dot(h1, w2_ref[...], preferred_element_type=jnp.float32) + b2_ref[...]
    h2 = jnp.maximum(h2, 0.0).astype(jnp.bfloat16)
    out = jnp.dot(h2, w3_ref[...], preferred_element_type=jnp.float32) + b3_ref[...]
    o_ref[...] = out.astype(o_ref.dtype)


def prepare_params(params):
    """Bake MaskedLinear masks into the weights once (outside the per-call
    path), zero-pad to lane multiples, and cast matmul operands to bf16.
    Biases stay f32 (added to the f32 accumulator in-kernel)."""
    w1, b1, m1, w2, b2, m2, w3, b3, m3 = params

    def pack(w, m, b, in_pad, out_pad):
        wm = (w * m).astype(jnp.float32)
        wp = jnp.zeros((in_pad, out_pad), jnp.float32)
        wp = wp.at[: w.shape[0], : w.shape[1]].set(wm)
        bp = jnp.zeros((1, out_pad), jnp.float32)
        bp = bp.at[:, : b.shape[1]].set(b)
        return wp.astype(jnp.bfloat16), bp

    w1p, b1p = pack(w1, m1, b1, IN_PAD, HID_PAD)
    w2p, b2p = pack(w2, m2, b2, HID_PAD, HID_PAD)
    w3p, b3p = pack(w3, m3, b3, HID_PAD, OUT_PAD)
    return (w1p, b1p, w2p, b2p, w3p, b3p)


def _choose_tile_b(batch):
    """Largest batch tile that (a) amortizes the ~0.35 us/step grid overhead,
    (b) keeps >= 2 grid steps so the 'parallel' axis shards across v7x's two
    TensorCores, (c) caps VMEM at ~10 MiB (tile_b <= 1024)."""
    if batch >= 2048:
        return min(1024, max(256, (batch // 4) // 256 * 256))
    if batch >= 16:
        return max(8, (batch // 2) // 8 * 8)
    return 8


@jax.jit
def mlp_forward(x_nchw, prepared):
    """x_nchw: (B, 1, 28, 28) float32.  Returns logits (B, 10) float32."""
    w1, b1, w2, b2, w3, b3 = prepared
    B = x_nchw.shape[0]
    tile_b = _choose_tile_b(B)

    # torch: x.view(B, -1); a contiguous reshape is free (no HBM copy).
    x = x_nchw.reshape(B, -1)          # (B, 784) f32, fed unpadded to the kernel
    Bp = B
    if B < tile_b:                     # only for very small batches (< 8 rows)
        Bp = tile_b
        x = jnp.zeros((Bp, IN_DIM), x.dtype).at[:B].set(x)

    grid = (pl.cdiv(Bp, tile_b),)      # ragged last block handled by Pallas
    resident = lambda shape: pl.BlockSpec(shape, lambda i: (0, 0))

    out = pl.pallas_call(
        _mlp_kernel,
        out_shape=jax.ShapeDtypeStruct((Bp, OUT_PAD), jnp.float32),
        grid=grid,
        in_specs=[
            pl.BlockSpec((tile_b, IN_DIM), lambda i: (i, 0)),   # x tile (f32, unpadded)
            resident((IN_PAD, HID_PAD)),                        # w1 (VMEM-resident)
            resident((1, HID_PAD)),                             # b1
            resident((HID_PAD, HID_PAD)),                       # w2
            resident((1, HID_PAD)),                             # b2
            resident((HID_PAD, OUT_PAD)),                       # w3
            resident((1, OUT_PAD)),                             # b3
        ],
        out_specs=pl.BlockSpec((tile_b, OUT_PAD), lambda i: (i, 0)),
        scratch_shapes=[pltpu.VMEM((tile_b, IN_PAD), jnp.bfloat16)],  # K-padded x
        compiler_params=pltpu.CompilerParams(
            dimension_semantics=("parallel",),
            vmem_limit_bytes=32 * 1024 * 1024,   # v5e default scoped VMEM is 16 MiB
        ),
    )(x, w1, b1, w2, b2, w3, b3)

    return out[:B, :OUT_DIM]


def init_params(key):
    """Deterministic init matching nn.Linear shapes (stored transposed: (in, out))."""
    ks = jax.random.split(key, 6)

    def linear(kw, kb, fan_in, fan_out):
        bound = 1.0 / (fan_in ** 0.5)
        w = jax.random.uniform(kw, (fan_in, fan_out), jnp.float32, -bound, bound)
        b = jax.random.uniform(kb, (1, fan_out), jnp.float32, -bound, bound)
        m = jnp.ones((fan_in, fan_out), jnp.float32)  # MaskedLinear mask (ones)
        return w, b, m

    w1, b1, m1 = linear(ks[0], ks[1], IN_DIM, HID)
    w2, b2, m2 = linear(ks[2], ks[3], HID, HID)
    w3, b3, m3 = linear(ks[4], ks[5], HID, OUT_DIM)
    return (w1, b1, m1, w2, b2, m2, w3, b3, m3)


def _reference(x_nchw, params):
    """JAX reference mirroring the kernel's bf16-operand / f32-accumulate math."""
    w1, b1, m1, w2, b2, m2, w3, b3, m3 = params
    x = x_nchw.reshape(x_nchw.shape[0], -1).astype(jnp.bfloat16)
    w1m = (w1 * m1).astype(jnp.bfloat16)
    w2m = (w2 * m2).astype(jnp.bfloat16)
    w3m = (w3 * m3).astype(jnp.bfloat16)
    h = jnp.maximum(jnp.dot(x, w1m, preferred_element_type=jnp.float32) + b1, 0.0)
    h = h.astype(jnp.bfloat16)
    h = jnp.maximum(jnp.dot(h, w2m, preferred_element_type=jnp.float32) + b2, 0.0)
    h = h.astype(jnp.bfloat16)
    return jnp.dot(h, w3m, preferred_element_type=jnp.float32) + b3


if __name__ == "__main__":
    key = jax.random.PRNGKey(0)
    k_x, k_p = jax.random.split(key)

    batch = 512  # tile_b=256 -> 2 grid steps (both v7x TensorCores exercised)
    x = jax.random.normal(k_x, (batch, 1, 28, 28), jnp.float32)  # NCHW, MNIST-like
    params = init_params(k_p)
    prepared = prepare_params(params)  # masks baked once, outside per-call path

    out = mlp_forward(x, prepared)
    out = jax.block_until_ready(out)

    ref = _reference(x, params)
    assert out.shape == (batch, OUT_DIM), out.shape
    assert jnp.allclose(out, ref, atol=1e-2, rtol=1e-2), "mismatch vs JAX reference"

    print("KERNEL_OK")
</pallas_src>

<mosaic_0001>
module attributes {stable_mosaic.version = 11 : i64} {
  func.func @_mlp_kernel(%arg0: i32, %arg1: memref<256x784xf32, #tpu.memory_space<vmem>>, %arg2: memref<896x256xbf16, #tpu.memory_space<vmem>>, %arg3: memref<1x256xf32, #tpu.memory_space<vmem>>, %arg4: memref<256x256xbf16, #tpu.memory_space<vmem>>, %arg5: memref<1x256xf32, #tpu.memory_space<vmem>>, %arg6: memref<256x128xbf16, #tpu.memory_space<vmem>>, %arg7: memref<1x128xf32, #tpu.memory_space<vmem>>, %arg8: memref<256x128xf32, #tpu.memory_space<vmem>>, %arg9: memref<256x896xbf16, #tpu.memory_space<vmem>>) attributes {dimension_semantics = [#tpu.dimension_semantics<parallel>], iteration_bounds = array<i64: 2>, scalar_prefetch = 0 : i64, scratch_operands = 1 : i64, tpu.core_type = #tpu.core_type<tc>, window_params = [{transform_indices = @transform_0, window_bounds = array<i64: 256, 784>}, {pipeline_mode = #tpu.pipeline_mode<synchronous>, transform_indices = @transform_1, window_bounds = array<i64: 896, 256>}, {pipeline_mode = #tpu.pipeline_mode<synchronous>, transform_indices = @transform_2, window_bounds = array<i64: 1, 256>}, {pipeline_mode = #tpu.pipeline_mode<synchronous>, transform_indices = @transform_3, window_bounds = array<i64: 256, 256>}, {pipeline_mode = #tpu.pipeline_mode<synchronous>, transform_indices = @transform_4, window_bounds = array<i64: 1, 256>}, {pipeline_mode = #tpu.pipeline_mode<synchronous>, transform_indices = @transform_5, window_bounds = array<i64: 256, 128>}, {pipeline_mode = #tpu.pipeline_mode<synchronous>, transform_indices = @transform_6, window_bounds = array<i64: 1, 128>}, {transform_indices = @transform_7, window_bounds = array<i64: 256, 128>}]} {
    %cst = arith.constant 0.000000e+00 : bf16
    %0 = vector.broadcast %cst : bf16 to vector<256x112xbf16>
    %c0 = arith.constant 0 : index
    %c784 = arith.constant 784 : index
    %1 = vector.load %arg9[%c0, %c784] : memref<256x896xbf16, #tpu.memory_space<vmem>>, vector<256x112xbf16>
    tpu.vector_store %arg9[%c0, %c784], %0 {strides = array<i32>} : memref<256x896xbf16, #tpu.memory_space<vmem>>, vector<256x112xbf16>,
    %c0_0 = arith.constant 0 : index
    %c0_1 = arith.constant 0 : index
    %2 = vector.load %arg1[%c0_0, %c0_1] : memref<256x784xf32, #tpu.memory_space<vmem>>, vector<256x784xf32>
    %3 = arith.truncf %2 : vector<256x784xf32> to vector<256x784xbf16>
    %c0_2 = arith.constant 0 : index
    %c0_3 = arith.constant 0 : index
    %4 = vector.load %arg9[%c0_2, %c0_3] : memref<256x896xbf16, #tpu.memory_space<vmem>>, vector<256x784xbf16>
    tpu.vector_store %arg9[%c0_2, %c0_3], %3 {strides = array<i32>} : memref<256x896xbf16, #tpu.memory_space<vmem>>, vector<256x784xbf16>,
    %c0_4 = arith.constant 0 : index
    %c0_5 = arith.constant 0 : index
    %5 = vector.load %arg9[%c0_4, %c0_5] : memref<256x896xbf16, #tpu.memory_space<vmem>>, vector<256x896xbf16>
    %c0_6 = arith.constant 0 : index
    %c0_7 = arith.constant 0 : index
    %6 = vector.load %arg2[%c0_6, %c0_7] : memref<896x256xbf16, #tpu.memory_space<vmem>>, vector<896x256xbf16>
    %cst_8 = arith.constant dense<0.000000e+00> : vector<256x256xf32>
    %7 = tpu.matmul %5, %6, %cst_8 {dimension_numbers = #tpu.dot_dimension_numbers<[1], [0], [0], [1], [0, 0, 1, 1], [], []>} : vector<256x896xbf16>, vector<896x256xbf16>, vector<256x256xf32> -> vector<256x256xf32>
    %c0_9 = arith.constant 0 : index
    %c0_10 = arith.constant 0 : index
    %8 = vector.load %arg3[%c0_9, %c0_10] : memref<1x256xf32, #tpu.memory_space<vmem>>, vector<1x256xf32>
    %9 = vector.broadcast %8 : vector<1x256xf32> to vector<256x256xf32>
    %10 = arith.addf %7, %9 : vector<256x256xf32>
    %cst_11 = arith.constant 0.000000e+00 : f32
    %11 = vector.broadcast %cst_11 : f32 to vector<256x256xf32>
    %12 = arith.maximumf %10, %11 : vector<256x256xf32>
    %13 = arith.truncf %12 : vector<256x256xf32> to vector<256x256xbf16>
    %c0_12 = arith.constant 0 : index
    %c0_13 = arith.constant 0 : index
    %14 = vector.load %arg4[%c0_12, %c0_13] : memref<256x256xbf16, #tpu.memory_space<vmem>>, vector<256x256xbf16>
    %cst_14 = arith.constant dense<0.000000e+00> : vector<256x256xf32>
    %15 = tpu.matmul %13, %14, %cst_14 {dimension_numbers = #tpu.dot_dimension_numbers<[1], [0], [0], [1], [0, 0, 1, 1], [], []>} : vector<256x256xbf16>, vector<256x256xbf16>, vector<256x256xf32> -> vector<256x256xf32>
    %c0_15 = arith.constant 0 : index
    %c0_16 = arith.constant 0 : index
    %16 = vector.load %arg5[%c0_15, %c0_16] : memref<1x256xf32, #tpu.memory_space<vmem>>, vector<1x256xf32>
    %17 = vector.broadcast %16 : vector<1x256xf32> to vector<256x256xf32>
    %18 = arith.addf %15, %17 : vector<256x256xf32>
    %cst_17 = arith.constant 0.000000e+00 : f32
    %19 = vector.broadcast %cst_17 : f32 to vector<256x256xf32>
    %20 = arith.maximumf %18, %19 : vector<256x256xf32>
    %21 = arith.truncf %20 : vector<256x256xf32> to vector<256x256xbf16>
    %c0_18 = arith.constant 0 : index
    %c0_19 = arith.constant 0 : index
    %22 = vector.load %arg6[%c0_18, %c0_19] : memref<256x128xbf16, #tpu.memory_space<vmem>>, vector<256x128xbf16>
    %cst_20 = arith.constant dense<0.000000e+00> : vector<256x128xf32>
    %23 = tpu.matmul %21, %22, %cst_20 {dimension_numbers = #tpu.dot_dimension_numbers<[1], [0], [0], [1], [0, 0, 1, 1], [], []>} : vector<256x256xbf16>, vector<256x128xbf16>, vector<256x128xf32> -> vector<256x128xf32>
    %c0_21 = arith.constant 0 : index
    %c0_22 = arith.constant 0 : index
    %24 = vector.load %arg7[%c0_21, %c0_22] : memref<1x128xf32, #tpu.memory_space<vmem>>, vector<1x128xf32>
    %25 = vector.broadcast %24 : vector<1x128xf32> to vector<256x128xf32>
    %26 = arith.addf %23, %25 : vector<256x128xf32>
    %c0_23 = arith.constant 0 : index
    %c0_24 = arith.constant 0 : index
    %27 = vector.load %arg8[%c0_23, %c0_24] : memref<256x128xf32, #tpu.memory_space<vmem>>, vector<256x128xf32>
    tpu.vector_store %arg8[%c0_23, %c0_24], %26 {strides = array<i32>} : memref<256x128xf32, #tpu.memory_space<vmem>>, vector<256x128xf32>,
    return
  }
  func.func @transform_0(%arg0: i32) -> (i32, i32) {
    %c0_i32 = arith.constant 0 : i32
    %c0_i32_0 = arith.constant 0 : i32
    return %arg0, %c0_i32 : i32, i32
  }
  func.func @transform_1(%arg0: i32) -> (i32, i32) {
    %c0_i32 = arith.constant 0 : i32
    %c0_i32_0 = arith.constant 0 : i32
    %c0_i32_1 = arith.constant 0 : i32
    return %c0_i32, %c0_i32_0 : i32, i32
  }
  func.func @transform_2(%arg0: i32) -> (i32, i32) {
    %c0_i32 = arith.constant 0 : i32
    %c0_i32_0 = arith.constant 0 : i32
    %c0_i32_1 = arith.constant 0 : i32
    return %c0_i32, %c0_i32_0 : i32, i32
  }
  func.func @transform_3(%arg0: i32) -> (i32, i32) {
    %c0_i32 = arith.constant 0 : i32
    %c0_i32_0 = arith.constant 0 : i32
    %c0_i32_1 = arith.constant 0 : i32
    return %c0_i32, %c0_i32_0 : i32, i32
  }
  func.func @transform_4(%arg0: i32) -> (i32, i32) {
    %c0_i32 = arith.constant 0 : i32
    %c0_i32_0 = arith.constant 0 : i32
    %c0_i32_1 = arith.constant 0 : i32
    return %c0_i32, %c0_i32_0 : i32, i32
  }
  func.func @transform_5(%arg0: i32) -> (i32, i32) {
    %c0_i32 = arith.constant 0 : i32
    %c0_i32_0 = arith.constant 0 : i32
    %c0_i32_1 = arith.constant 0 : i32
    return %c0_i32, %c0_i32_0 : i32, i32
  }
  func.func @transform_6(%arg0: i32) -> (i32, i32) {
    %c0_i32 = arith.constant 0 : i32
    %c0_i32_0 = arith.constant 0 : i32
    %c0_i32_1 = arith.constant 0 : i32
    return %c0_i32, %c0_i32_0 : i32, i32
  }
  func.func @transform_7(%arg0: i32) -> (i32, i32) {
    %c0_i32 = arith.constant 0 : i32
    %c0_i32_0 = arith.constant 0 : i32
    return %arg0, %c0_i32 : i32, i32
  }
}

</mosaic_0001>

<bundles_post_ra>
// kernel: mlp_forward.1
= control target key start
LH: loop header
LB: loop body
LE: loop exit
PB: predicated region body
PF: predicated region fallthrough
CT: control target
= control target key end

     0   :  { %s4124_s24 = smov 0   ;;  %s5899_s0 = inlined_call_operand.vmem [shape: f32[512,784], index: 0, kind: input, shape index: {}]   ;;  %s5900_s1 = inlined_call_operand.vmem [shape: bf16[896,256], index: 1, kind: input, shape index: {}]   ;;  %s5901_s2 = inlined_call_operand.vmem [shape: f32[1,256], index: 2, kind: input, shape index: {}]   ;;  %s5902_s3 = inlined_call_operand.vmem [shape: bf16[256,256], index: 3, kind: input, shape index: {}]   ;;  %s5903_s4 = inlined_call_operand.vmem [shape: f32[1,256], index: 4, kind: input, shape index: {}]   ;;  %s5904_s5 = inlined_call_operand.vmem [shape: bf16[256,128], index: 5, kind: input, shape index: {}]   ;;  %s5905_s6 = inlined_call_operand.vmem [shape: f32[1,128], index: 6, kind: input, shape index: {}]   ;;  %s5906_s7 = inlined_call_operand.vmem [shape: f32[512,128], index: 7, kind: output, shape index: {}]  }
   0x1 LB: > { %s3293_s25 = sadd.s32 4294967295, %s4081_s24   ;;  %p3297_p0 = scmp.ge.s32.totalorder %s4081_s24, 1  ;;  %s4081_s24 = sphi %s4124_s24, %s17_s24  }
   0x2   : > { %p239_p1 = scmp.lt.s32.totalorder %s4081_s24, 3 }
   0x4   : > { %p240_p2 = pnand %p3297_p0, %p239_p1 }
   0x6   : > { %243 = sbr.rel (%p240_p2) target bundleno = 1118 (0x45e), region = 48 }
   0xd   : > { %v3843_v0 = vld [vmem:[%s5900_s1 + $0x104] ss:$8 sps:$4 sm:$0xff]   ;;  %v3845_v1 = vld [vmem:[%s5900_s1 + $0x100] ss:$8 sps:$4 sm:$0xff]   ;;  %v3846_v2 = vld [vmem:[%s5900_s1 + $0x114] ss:$8 sps:$4 sm:$0xff]  }
   0xe   : > { %1741 = vmatprep.subr.bf16.mxu0 %v3843_v0  ;;  %v3848_v3 = vld [vmem:[%s5900_s1 + $0x110] ss:$8 sps:$4 sm:$0xff]   ;;  %s3298_s11 = sshll.u32 %s3293_s25, 5  ;;  %v3849_v4 = vld [vmem:[%s5900_s1 + $0x124] ss:$8 sps:$4 sm:$0xff]   ;;  %vm286_vm0 = vcmask 1047680  }
   0xf   : > { %1742 = vmatpush1.bf16.msra.mxu0 %v3845_v1  ;;  %p273_p3 = scmp.lt.s32.totalorder %s3298_s11, 63  ;;  %v3851_v5 = vld [vmem:[%s5900_s1 + $0x120] ss:$8 sps:$4 sm:$0xff]   ;;  %v3852_v6 = vld [vmem:[%s5900_s1 + $0x134] ss:$8 sps:$4 sm:$0xff]   ;;  %vm645_vm1 = vcmask 130048  }
  0x10   : > { %1743 = vmatprep.subr.bf16.mxu0 %v3846_v2  ;;  %v3854_v7 = vld [vmem:[%s5900_s1 + $0x130] ss:$8 sps:$4 sm:$0xff]   ;;  %v3855_v8 = vld [vmem:[%s5900_s1 + $0x144] ss:$8 sps:$4 sm:$0xff]   ;;  %v3857_v9 = vld [vmem:[%s5900_s1 + $0x140] ss:$8 sps:$4 sm:$0xff]  }
  0x11   : > { %s6084_s11 = smov (!%p273_p3, %s3298_s11), 63  ;;  %v3858_v10 = vld [vmem:[%s5900_s1 + $0x154] ss:$8 sps:$4 sm:$0xff]   ;;  %v3860_v11 = vld [vmem:[%s5900_s1 + $0x150] ss:$8 sps:$4 sm:$0xff]  }
  0x12   : > { %s3833_s22 = smul.u32 56, %s6084_s11  ;;  %v3861_v12 = vld [vmem:[%s5900_s1 + $0x164] ss:$8 sps:$4 sm:$0xff]   ;;  %v3863_v18 = vld [vmem:[%s5900_s1 + $0x160] ss:$8 sps:$4 sm:$0xff]  }
  0x13   : > { %1744 = vmatpush1.bf16.msra.mxu0 %v3848_v3  ;;  %v3864_v19 = vld [vmem:[%s5900_s1 + $0x174] ss:$8 sps:$4 sm:$0xff]   ;;  %v3866_v26 = vld [vmem:[%s5900_s1 + $0x170] ss:$8 sps:$4 sm:$0xff]   ;;  %v3867_v32 = vld [vmem:[%s5900_s1 + $0x184] ss:$8 sps:$4 sm:$0xff]  }
  0x14   : > { %1745 = vmatprep.subr.bf16.mxu0 %v3849_v4  ;;  %s4171_s30 = scalar_lea.vmem %s5899_s0, %s3833_s22  ;;  %v3869_v40 = vld [vmem:[%s5900_s1 + $0x180] ss:$8 sps:$4 sm:$0xff]   ;;  %v3870_v41 = vld [vmem:[%s5900_s1 + $0x194] ss:$8 sps:$4 sm:$0xff]   ;;  %v3872_v48 = vld [vmem:[%s5900_s1 + $0x190] ss:$8 sps:$4 sm:$0xff]  }
  0x15   : > { %v306_v13 = vld [vmem:[%s4171_s30 + $0x18] sm:$0xff]  ;;  %v313_v14 = vld [vmem:[%s4171_s30 + $0x50] sm:$0xff]  ;;  %v4185_v17 = vld [vmem:[%s4171_s30 + $0x48] sm:$0xff] }
  0x16   : > { %v530_v15 = vpack.c.bf16 %v313_v14, %v306_v13  ;;  %v4182_v16 = vld [vmem:[%s4171_s30 + $0x10] sm:$0xff]  ;;  %v4196_v21 = vld [vmem:[%s4171_s30 + $0x88] sm:$0xff]  ;;  %v4199_v22 = vld [vmem:[%s4171_s30 + $0xc0] sm:$0xff] }
  0x17   : > { %1746 = vmatpush1.bf16.msra.mxu0 %v3851_v5  ;;  %v4202_v23 = vld [vmem:[%s4171_s30 + $0x80] sm:$0xff]  ;;  %v4207_v25 = vld [vmem:[%s4171_s30 + $0xb8] sm:$0xff]  ;;  %v4218_v29 = vld [vmem:[%s4171_s30 + $0x130] sm:$0xff] }
  0x18   : > { %1747 = vmatprep.subr.bf16.mxu0 %v3852_v6  ;;  %1773 = vmatprep.mubr.bf16.mxu0 %v530_v15  ;;  %v4215_v28 = vld [vmem:[%s4171_s30 + $0xf8] sm:$0xff]  ;;  %v4221_v30 = vld [vmem:[%s4171_s30 + $0xf0] sm:$0xff]  ;;  %v4224_v31 = vld [vmem:[%s4171_s30 + $0x128] sm:$0xff] }
  0x19   : > { %v4234_v35 = vld [vmem:[%s4171_s30 + $0x168] sm:$0xff]  ;;  %v4237_v36 = vld [vmem:[%s4171_s30 + $0x1a0] sm:$0xff]  ;;  %v4245_v39 = vld [vmem:[%s4171_s30 + $0x198] sm:$0xff] }
  0x1a   : > { %v4242_v38 = vld [vmem:[%s4171_s30 + $0x160] sm:$0xff]  ;;  %v4256_v43 = vld [vmem:[%s4171_s30 + $0x1d8] sm:$0xff]  ;;  %v4259_v44 = vld [vmem:[%s4171_s30 + $0x210] sm:$0xff] }
  0x1b   : > { %1748 = vmatpush1.bf16.msra.mxu0 %v3854_v7  ;;  %v4262_v45 = vld [vmem:[%s4171_s30 + $0x1d0] sm:$0xff]  ;;  %v4267_v47 = vld [vmem:[%s4171_s30 + $0x208] sm:$0xff]  ;;  %v4278_v51 = vld [vmem:[%s4171_s30 + $0x280] sm:$0xff] }
  0x1c   : > { %1749 = vmatprep.subr.bf16.mxu0 %v3855_v8  ;;  %v4275_v50 = vld [vmem:[%s4171_s30 + $0x248] sm:$0xff]  ;;  %v4281_v52 = vld [vmem:[%s4171_s30 + $0x240] sm:$0xff]  ;;  %v4284_v53 = vld [vmem:[%s4171_s30 + $0x278] sm:$0xff] }
  0x1d   : > { %v3873_v54 = vld [vmem:[%s5900_s1 + $0x1a4] ss:$8 sps:$4 sm:$0xff]   ;;  %v4294_v57 = vld [vmem:[%s4171_s30 + $0x2b8] sm:$0xff]  ;;  %v4297_v58 = vld [vmem:[%s4171_s30 + $0x2f0] sm:$0xff] }
  0x1e   : > { %v4302_v60 = vld [vmem:[%s4171_s30 + $0x2b0] sm:$0xff]  ;;  %v4305_v61 = vld [vmem:[%s4171_s30 + $0x2e8] sm:$0xff]  ;;  %v4319_v2 = vld [vmem:[%s4171_s30 + $0x360] sm:$0xff] }
  0x1f   : > { %1750 = vmatpush1.bf16.msra.mxu0 %v3857_v9  ;;  %v3875_v62 = vld [vmem:[%s5900_s1 + $0x1a0] ss:$8 sps:$4 sm:$0xff]   ;;  %v3876_v63 = vld [vmem:[%s5900_s1 + $0x1b4] ss:$8 sps:$4 sm:$0xff]   ;;  %v3878_v6 = vld [vmem:[%s5900_s1 + $0x1b0] ss:$8 sps:$4 sm:$0xff]  }
  0x20   : > { %1751 = vmatprep.subr.bf16.mxu0 %v3858_v10  ;;  %v4316_v1 = vld [vmem:[%s4171_s30 + $0x328] sm:$0xff]  ;;  %v4322_v3 = vld [vmem:[%s4171_s30 + $0x320] sm:$0xff]  ;;  %v4327_v5 = vld [vmem:[%s4171_s30 + $0x358] sm:$0xff] }
  0x21   : > { %v4335_v8 = vld [vmem:[%s4171_s30 + $0x398] sm:$0xff]  ;;  %v4338_v9 = vld [vmem:[%s4171_s30 + $0x3d0] sm:$0xff]  ;;  %v4354_v15 = vld [vmem:[%s4171_s30 + $0x408] sm:$0xff] }
  0x22   : > { %v4341_v10 = vld [vmem:[%s4171_s30 + $0x390] sm:$0xff]  ;;  %v4395_v14 = vld [vmem:[%s4171_s30 + $0x4e8] sm:$0xff]  ;;  %v4398_v13 = vld [vmem:[%s4171_s30 + $0x520] sm:$0xff] }
  0x23   : > { %1752 = vmatpush1.bf16.msra.mxu0 %v3860_v11  ;;  %v4344_v11 = vld [vmem:[%s4171_s30 + $0x3c8] sm:$0xff]  ;;  %v4401_v7 = vld [vmem:[%s4171_s30 + $0x4e0] sm:$0xff]  ;;  %v4414_v0 = vld [vmem:[%s4171_s30 + $0x558] sm:$0xff] }
  0x24   : > { %1753 = vmatprep.subr.bf16.mxu0 %v3861_v12  ;;  %v3879_v12 = vld [vmem:[%s5900_s1 + $0x1c4] ss:$8 sps:$4 sm:$0xff]   ;;  %v4417_v59 = vld [vmem:[%s4171_s30 + $0x590] sm:$0xff]  ;;  %v4447_v37 = vld [vmem:[%s4171_s30 + $0x5f8] sm:$0xff] }
  0x25   : > { %v3885_v4 = vld [vmem:[%s5900_s1 + $0x1e4] ss:$8 sps:$4 sm:$0xff]   ;;  %v4422_v56 = vld [vmem:[%s4171_s30 + $0x550] sm:$0xff]  ;;  %5936 = vst [vmem:[#allocation5_spill] sm:$0xff] %v4447_v37  ;;  %v4455_v34 = vld [vmem:[%s4171_s30 + $0x638] sm:$0xff] }
  0x26   : > { %v4425_v55 = vld [vmem:[%s4171_s30 + $0x588] sm:$0xff]  ;;  %v4439_v46 = vld [vmem:[%s4171_s30 + $0x600] sm:$0xff]  ;;  %v3890_v49 = vld [vmem:[%s5900_s1 + $0x1f0] ss:$8 sps:$4 sm:$0xff]   ;;  %5937 = vst [vmem:[#allocation6_spill] sm:$0xff] %v4455_v34  ;;  %v5944_v34 = vpack.c.bf16 %v4185_v17, %v4182_v16 }
  0x27   : > { %1754 = vmatpush1.bf16.msra.mxu0 %v3863_v18  ;;  %v4357_v18 = vld [vmem:[%s4171_s30 + $0x440] sm:$0xff]  ;;  %v4458_v33 = vld [vmem:[%s4171_s30 + $0x670] sm:$0xff]  ;;  %v4464_v42 = vld [vmem:[%s4171_s30 + $0x668] sm:$0xff] }
  0x28   : > { %1755 = vmatprep.subr.bf16.mxu0 %v3864_v19  ;;  %v4387_v19 = vld [vmem:[%s4171_s30 + $0x4a8] sm:$0xff]  ;;  %v4461_v27 = vld [vmem:[%s4171_s30 + $0x630] sm:$0xff]  ;;  %5939 = vst [vmem:[#allocation8_spill] sm:$0xff] %v4464_v42  ;;  %v4507_v42 = vld [vmem:[%s4171_s30 + $0x58] sm:$0xff] }
  0x29   : > { %5938 = vst [vmem:[#allocation7_spill] sm:$0xff] %v4461_v27  ;;  %v3893_v24 = vld [vmem:[%s5900_s1 + $0x204] ss:$8 sps:$4 sm:$0xff]   ;;  %v4524_v16 = vld [vmem:[%s4171_s30 + $0x98] sm:$0xff]  ;;  %v4527_v17 = vld [vmem:[%s4171_s30 + $0xd0] sm:$0xff] }
  0x2a   : > { %v4474_v20 = vld [vmem:[%s4171_s30 + $0x6a8] sm:$0xff]  ;;  %5946 = vst [vmem:[#allocation13_spill] sm:$0xff] %v4524_v16 }
  0x2b   : > { %1756 = vmatpush1.bf16.msra.mxu0 %v3866_v26  ;;  %v4362_v26 = vld [vmem:[%s4171_s30 + $0x400] sm:$0xff]  ;;  %5940 = vst [vmem:[#allocation9_spill] sm:$0xff] %v4474_v20  ;;  %v4496_v37 = vld [vmem:[%s4171_s30 + $0x28] sm:$0xff] }
  0x2c   : > { %1757 = vmatprep.subr.bf16.mxu0 %v3867_v32  ;;  %v4365_v32 = vld [vmem:[%s4171_s30 + $0x438] sm:$0xff]  ;;  %5943 = vst [vmem:[#allocation12_spill] sm:$0xff] %v4496_v37  ;;  %v4499_v20 = vld [vmem:[%s4171_s30 + $0x60] sm:$0xff]  ;;  %v4555_v16 = vld [vmem:[%s4171_s30 + $0x108] sm:$0xff] }
  0x2d   : > { %v3899_v27 = vld [vmem:[%s5900_s1 + $0x224] ss:$8 sps:$4 sm:$0xff]  }
  0x2e   : > { %v3905_v37 = vld [vmem:[%s5900_s1 + $0x244] ss:$8 sps:$4 sm:$0xff]  }
  0x2f   : > { %1758 = vmatpush1.bf16.msra.mxu0 %v3869_v40  ;;  %v3881_v40 = vld [vmem:[%s5900_s1 + $0x1c0] ss:$8 sps:$4 sm:$0xff]  }
  0x30   : > { %1759 = vmatprep.subr.bf16.mxu0 %v3870_v41  ;;  %v3882_v41 = vld [vmem:[%s5900_s1 + $0x1d4] ss:$8 sps:$4 sm:$0xff]  }
  0x33   : > { %1760 = vmatpush1.bf16.msra.mxu0 %v3872_v48  ;;  %v3884_v48 = vld [vmem:[%s5900_s1 + $0x1d0] ss:$8 sps:$4 sm:$0xff]  }
  0x34   : > { %1761 = vmatprep.subr.bf16.mxu0 %v3873_v54  ;;  %v4376_v54 = vld [vmem:[%s4171_s30 + $0x478] sm:$0xff] }
  0x37   : > { %1762 = vmatpush1.bf16.msra.mxu0 %v3875_v62  ;;  %v4379_v62 = vld [vmem:[%s4171_s30 + $0x4b0] sm:$0xff] }
  0x38   : > { %1763 = vmatprep.subr.bf16.mxu0 %v3876_v63  ;;  %v4382_v63 = vld [vmem:[%s4171_s30 + $0x470] sm:$0xff] }
  0x3b   : > { %1764 = vmatpush1.bf16.msra.mxu0 %v3878_v6  ;;  %v4404_v6 = vld [vmem:[%s4171_s30 + $0x518] sm:$0xff] }
  0x3c   : > { %1765 = vmatprep.subr.bf16.mxu0 %v3879_v12  ;;  %v3888_v12 = vld [vmem:[%s5900_s1 + $0x1f4] ss:$8 sps:$4 sm:$0xff]  }
  0x3f   : > { %1766 = vmatpush1.bf16.msra.mxu0 %v3881_v40  ;;  %v3887_v40 = vld [vmem:[%s5900_s1 + $0x1e0] ss:$8 sps:$4 sm:$0xff]  }
  0x40   : > { %1767 = vmatprep.subr.bf16.mxu0 %v3882_v41  ;;  %v4436_v41 = vld [vmem:[%s4171_s30 + $0x5c8] sm:$0xff] }
  0x41   : > { %5934 = vst [vmem:[#allocation3_spill] sm:$0xff] %v4436_v41  ;;  %v4485_v41 = vld [vmem:[%s4171_s30 + $0x6d8] sm:$0xff] }
  0x43   : > { %1768 = vmatpush1.bf16.msra.mxu0 %v3884_v48  ;;  %v4442_v48 = vld [vmem:[%s4171_s30 + $0x5c0] sm:$0xff] }
  0x44   : > { %1769 = vmatprep.subr.bf16.mxu0 %v3885_v4  ;;  %5935 = vst [vmem:[#allocation4_spill] sm:$0xff] %v4442_v48  ;;  %v4477_v48 = vld [vmem:[%s4171_s30 + $0x6e0] sm:$0xff] }
  0x45   : > { %5941 = vst [vmem:[#allocation10_spill] sm:$0xff] %v4477_v48  ;;  %v3891_v4 = vld [vmem:[%s5900_s1 + $0x200] ss:$8 sps:$4 sm:$0xff]   ;;  %v5945_v48 = vpack.c.bf16 %v4199_v22, %v4196_v21 }
  0x46   : > { %v3897_v21 = vld [vmem:[%s5900_s1 + $0x220] ss:$8 sps:$4 sm:$0xff]  }
  0x47   : > { %1770 = vmatpush1.bf16.msra.mxu0 %v3887_v40  ;;  %v3896_v40 = vld [vmem:[%s5900_s1 + $0x214] ss:$8 sps:$4 sm:$0xff]   ;;  %v4558_v22 = vld [vmem:[%s4171_s30 + $0x140] sm:$0xff] }
  0x48   : > { %1771 = vmatprep.subr.bf16.mxu0 %v3888_v12  ;;  %v4482_v12 = vld [vmem:[%s4171_s30 + $0x6a0] sm:$0xff] }
  0x49   : > { %5942 = vst [vmem:[#allocation11_spill] sm:$0xff] %v4482_v12  ;;  %v4535_v12 = vld [vmem:[%s4171_s30 + $0xc8] sm:$0xff] }
  0x4b   : > { %1772 = vmatpush1.bf16.msra.mxu0 %v3890_v49  ;;  %v4502_v49 = vld [vmem:[%s4171_s30 + $0x20] sm:$0xff] }
  0x4c   : > { %1934 = vmatprep.subr.bf16.mxu0 %v3893_v24  ;;  %v3894_v24 = vld [vmem:[%s5900_s1 + $0x210] ss:$8 sps:$4 sm:$0xff]  }
  0x4e   : > { %1774 = vmatmul.mubr.bf16.vlgmr.msra.gmra.mrb[0].mxu0 %v5944_v34  ;;  %v4530_v34 = vld [vmem:[%s4171_s30 + $0x90] sm:$0xff] }
  0x4f   : > { %1935 = vmatpush1.bf16.msra.mxu0 %v3891_v4  ;;  %1783 = vmatprep.mubr.bf16.mxu0 %v5945_v48  ;;  %v3902_v48 = vld [vmem:[%s5900_s1 + $0x234] ss:$8 sps:$4 sm:$0xff]   ;;  %v3900_v4 = vld [vmem:[%s5900_s1 + $0x230] ss:$8 sps:$4 sm:$0xff]  }
  0x50   : > { %1936 = vmatprep.subr.bf16.mxu0 %v3896_v40  ;;  %v5947_v40 = vpack.c.bf16 %v4207_v25, %v4202_v23  ;;  %v4566_v23 = vld [vmem:[%s4171_s30 + $0x100] sm:$0xff]  ;;  %v4569_v25 = vld [vmem:[%s4171_s30 + $0x138] sm:$0xff] }
  0x53   : > { %1937 = vmatpush1.bf16.msra.mxu0 %v3894_v24  ;;  %v5950_v24 = vpack.c.bf16 %v4237_v36, %v4234_v35  ;;  %v3909_v35 = vld [vmem:[%s5900_s1 + $0x260] ss:$8 sps:$4 sm:$0xff]   ;;  %v3914_v36 = vld [vmem:[%s5900_s1 + $0x274] ss:$8 sps:$4 sm:$0xff]  }
  0x54   : > { %1938 = vmatprep.subr.bf16.mxu0 %v3899_v27  ;;  %v5948_v27 = vpack.c.bf16 %v4218_v29, %v4215_v28  ;;  %v3903_v28 = vld [vmem:[%s5900_s1 + $0x240] ss:$8 sps:$4 sm:$0xff]   ;;  %v3908_v29 = vld [vmem:[%s5900_s1 + $0x254] ss:$8 sps:$4 sm:$0xff]  }
  0x56   : > { %1784 = vmatmul.mubr.bf16.gmra.mrb[4].mxu0 %v5947_v40  ;;  %v4589_v40 = vld [vmem:[%s4171_s30 + $0x178] sm:$0xff] }
  0x57   : > { %1793 = vmatprep.mubr.bf16.mxu0 %v5948_v27  ;;  %1939 = vmatpush1.bf16.msra.mxu0 %v3897_v21  ;;  %v5949_v21 = vpack.c.bf16 %v4224_v31, %v4221_v30  ;;  %v3911_v27 = vld [vmem:[%s5900_s1 + $0x264] ss:$8 sps:$4 sm:$0xff]   ;;  %v4598_v30 = vld [vmem:[%s4171_s30 + $0x170] sm:$0xff] }
  0x58   : > { %1940 = vmatprep.subr.bf16.mxu0 %v3902_v48  ;;  %v3906_v48 = vld [vmem:[%s5900_s1 + $0x250] ss:$8 sps:$4 sm:$0xff]   ;;  %v4601_v31 = vld [vmem:[%s4171_s30 + $0x1a8] sm:$0xff] }
  0x5b   : > { %1941 = vmatpush1.bf16.msra.mxu0 %v3900_v4  ;;  %v4626_v4 = vld [vmem:[%s4171_s30 + $0x220] sm:$0xff] }
  0x5c   : > { %1942 = vmatprep.subr.bf16.mxu0 %v3905_v37  ;;  %v4595_v37 = vld [vmem:[%s4171_s30 + $0x1b0] sm:$0xff] }
  0x5e   : > { %1794 = vmatmul.mubr.bf16.gmra.mrb[8].mxu0 %v5949_v21  ;;  %v4623_v21 = vld [vmem:[%s4171_s30 + $0x1e8] sm:$0xff] }
  0x5f   : > { %1803 = vmatprep.mubr.bf16.mxu0 %v5950_v24  ;;  %1943 = vmatpush1.bf16.msra.mxu0 %v3903_v28  ;;  %v3912_v24 = vld [vmem:[%s5900_s1 + $0x270] ss:$8 sps:$4 sm:$0xff]   ;;  %v5951_v28 = vpack.c.bf16 %v4245_v39, %v4242_v38  ;;  %v4634_v38 = vld [vmem:[%s4171_s30 + $0x1e0] sm:$0xff] }
  0x60   : > { %1944 = vmatprep.subr.bf16.mxu0 %v3908_v29  ;;  %v3917_v29 = vld [vmem:[%s5900_s1 + $0x284] ss:$8 sps:$4 sm:$0xff]   ;;  %v4637_v39 = vld [vmem:[%s4171_s30 + $0x218] sm:$0xff] }
  0x63   : > { %1945 = vmatpush1.bf16.msra.mxu0 %v3906_v48  ;;  %v5952_v48 = vpack.c.bf16 %v4259_v44, %v4256_v43  ;;  %v3915_v43 = vld [vmem:[%s5900_s1 + $0x280] ss:$8 sps:$4 sm:$0xff]   ;;  %v3920_v44 = vld [vmem:[%s5900_s1 + $0x294] ss:$8 sps:$4 sm:$0xff]  }
  0x64   : > { %1946 = vmatprep.subr.bf16.mxu0 %v3911_v27  ;;  %v5954_v27 = vpack.c.bf16 %v4278_v51, %v4275_v50  ;;  %v3921_v50 = vld [vmem:[%s5900_s1 + $0x2a0] ss:$8 sps:$4 sm:$0xff]   ;;  %v3926_v51 = vld [vmem:[%s5900_s1 + $0x2b4] ss:$8 sps:$4 sm:$0xff]  }
  0x66   : > { %1804 = vmatmul.mubr.bf16.gmra.mrb[12].mxu0 %v5951_v28  ;;  %v4657_v28 = vld [vmem:[%s4171_s30 + $0x258] sm:$0xff] }
  0x67   : > { %1813 = vmatprep.mubr.bf16.mxu0 %v5952_v48  ;;  %1947 = vmatpush1.bf16.msra.mxu0 %v3909_v35  ;;  %v5953_v35 = vpack.c.bf16 %v4267_v47, %v4262_v45  ;;  %v3923_v48 = vld [vmem:[%s5900_s1 + $0x2a4] ss:$8 sps:$4 sm:$0xff]   ;;  %v4666_v45 = vld [vmem:[%s4171_s30 + $0x250] sm:$0xff] }
  0x68   : > { %1948 = vmatprep.subr.bf16.mxu0 %v3914_v36  ;;  %v3918_v36 = vld [vmem:[%s5900_s1 + $0x290] ss:$8 sps:$4 sm:$0xff]   ;;  %v4669_v47 = vld [vmem:[%s4171_s30 + $0x288] sm:$0xff] }
  0x6b   : > { %1949 = vmatpush1.bf16.msra.mxu0 %v3912_v24  ;;  %v4663_v24 = vld [vmem:[%s4171_s30 + $0x290] sm:$0xff] }
  0x6c   : > { %1950 = vmatprep.subr.bf16.mxu0 %v3917_v29  ;;  %v4694_v29 = vld [vmem:[%s4171_s30 + $0x300] sm:$0xff] }
  0x6e   : > { %1814 = vmatmul.mubr.bf16.gmra.mrb[16].mxu0 %v5953_v35  ;;  %v4691_v35 = vld [vmem:[%s4171_s30 + $0x2c8] sm:$0xff] }
  0x6f   : > { %1823 = vmatprep.mubr.bf16.mxu0 %v5954_v27  ;;  %1951 = vmatpush1.bf16.msra.mxu0 %v3915_v43  ;;  %v3924_v27 = vld [vmem:[%s5900_s1 + $0x2b0] ss:$8 sps:$4 sm:$0xff]   ;;  %v5955_v43 = vpack.c.bf16 %v4284_v53, %v4281_v52  ;;  %v4702_v53 = vld [vmem:[%s4171_s30 + $0x2c0] sm:$0xff]  ;;  %v4734_v52 = vld [vmem:[%s4171_s30 + $0x368] sm:$0xff] }
  0x70   : > { %1952 = vmatprep.subr.bf16.mxu0 %v3920_v44  ;;  %v3929_v44 = vld [vmem:[%s5900_s1 + $0x2c4] ss:$8 sps:$4 sm:$0xff]  }
  0x73   : > { %1953 = vmatpush1.bf16.msra.mxu0 %v3918_v36  ;;  %v5956_v36 = vpack.c.bf16 %v4297_v58, %v4294_v57  ;;  %v3927_v57 = vld [vmem:[%s5900_s1 + $0x2c0] ss:$8 sps:$4 sm:$0xff]   ;;  %v3932_v58 = vld [vmem:[%s5900_s1 + $0x2d4] ss:$8 sps:$4 sm:$0xff]  }
  0x74   : > { %1954 = vmatprep.subr.bf16.mxu0 %v3923_v48  ;;  %v4705_v48 = vld [vmem:[%s4171_s30 + $0x2f8] sm:$0xff] }
  0x76   : > { %1824 = vmatmul.mubr.bf16.gmra.mrb[20].mxu0 %v5955_v43  ;;  %v5958_v43 = vpack.c.bf16 %v4319_v2, %v4316_v1  ;;  %v3933_v2 = vld [vmem:[%s5900_s1 + $0x2e0] ss:$8 sps:$4 sm:$0xff]   ;;  %v5960_v1 = vpack.c.bf16 %v4338_v9, %v4335_v8  ;;  %v4782_v9 = vld [vmem:[%s4171_s30 + $0x3d8] sm:$0xff]  ;;  %v3996_v8 = vld [vmem:[%s5900_s1 + $0xc4] ss:$8 sps:$4 sm:$0xff]  }
  0x77   : > { %1833 = vmatprep.mubr.bf16.mxu0 %v5956_v36  ;;  %1955 = vmatpush1.bf16.msra.mxu0 %v3921_v50  ;;  %v5957_v50 = vpack.c.bf16 %v4305_v61, %v4302_v60  ;;  %v4722_v36 = vld [vmem:[%s4171_s30 + $0x338] sm:$0xff]  ;;  %v3935_v60 = vld [vmem:[%s5900_s1 + $0x2e4] ss:$8 sps:$4 sm:$0xff]  }
  0x78   : > { %1956 = vmatprep.subr.bf16.mxu0 %v3926_v51  ;;  %v3930_v51 = vld [vmem:[%s5900_s1 + $0x2d0] ss:$8 sps:$4 sm:$0xff]   ;;  %v4768_v61 = vld [vmem:[%s4171_s30 + $0x3e0] sm:$0xff] }
  0x7b   : > { %1957 = vmatpush1.bf16.msra.mxu0 %v3924_v27  ;;  %v4728_v27 = vld [vmem:[%s4171_s30 + $0x370] sm:$0xff] }
  0x7c   : > { %1958 = vmatprep.subr.bf16.mxu0 %v3929_v44  ;;  %v4731_v44 = vld [vmem:[%s4171_s30 + $0x330] sm:$0xff] }
  0x7e   : > { %1834 = vmatmul.mubr.bf16.gmra.mrb[24].mxu0 %v5957_v50  ;;  %v3951_v50 = vld [vmem:[%s5900_s1 + $0x4] ss:$8 sps:$4 sm:$0xff]  }
  0x7f   : > { %1843 = vmatprep.mubr.bf16.mxu0 %v5958_v43  ;;  %1959 = vmatpush1.bf16.msra.mxu0 %v3927_v57  ;;  %v3938_v43 = vld [vmem:[%s5900_s1 + $0x2f4] ss:$8 sps:$4 sm:$0xff]   ;;  %v3936_v57 = vld [vmem:[%s5900_s1 + $0x2f0] ss:$8 sps:$4 sm:$0xff]  }
  0x80   : > { %1960 = vmatprep.subr.bf16.mxu0 %v3932_v58  ;;  %v5959_v58 = vpack.c.bf16 %v4327_v5, %v4322_v3  ;;  %v3954_v3 = vld [vmem:[%s5900_s1 + $0x14] ss:$8 sps:$4 sm:$0xff]   ;;  %v4774_v5 = vld [vmem:[%s4171_s30 + $0x3a0] sm:$0xff]  ;;  %1548 = vmatprep.subr.bf16.mxu1 %v3951_v50 }
  0x81   : > { %v3960_v50 = vld [vmem:[%s5900_s1 + $0x24] ss:$8 sps:$4 sm:$0xff]  }
  0x83   : > { %1961 = vmatpush1.bf16.msra.mxu0 %v3930_v51  ;;  %v3953_v51 = vld [vmem:[%s5900_s1] ss:$8 sps:$4 sm:$0xff]  }
  0x84   : > { %1962 = vmatprep.subr.bf16.mxu0 %v3935_v60  ;;  %v4762_v60 = vld [vmem:[%s4171_s30 + $0x3a8] sm:$0xff]  ;;  %1549 = vmatpush1.bf16.msra.mxu1 %v3953_v51  ;;  %v5962_v51 = vpack.c.bf16 %v4357_v18, %v4354_v15  ;;  %v4813_v15 = vld [vmem:[%s4171_s30 + $0x410] sm:$0xff] }
  0x85   : > { %1550 = vmatprep.subr.bf16.mxu1 %v3954_v3  ;;  %v4802_v3 = vld [vmem:[%s4171_s30 + $0x418] sm:$0xff]  ;;  %v4816_v18 = vld [vmem:[%s4171_s30 + $0x448] sm:$0xff] }
  0x86   : > { %1844 = vmatmul.mubr.bf16.gmra.mrb[28].mxu0 %v5959_v58  ;;  %v3941_v58 = vld [vmem:[%s5900_s1 + $0x304] ss:$8 sps:$4 sm:$0xff]  }
  0x87   : > { %1853 = vmatprep.mubr.bf16.mxu0 %v5960_v1  ;;  %1963 = vmatpush1.bf16.msra.mxu0 %v3933_v2  ;;  %v3959_v2 = vld [vmem:[%s5900_s1 + $0x10] ss:$8 sps:$4 sm:$0xff]  }
  0x88   : > { %1964 = vmatprep.subr.bf16.mxu0 %v3938_v43  ;;  %v5961_v43 = vpack.c.bf16 %v4344_v11, %v4341_v10  ;;  %1551 = vmatpush1.bf16.msra.mxu1 %v3959_v2  ;;  %v3963_v11 = vld [vmem:[%s5900_s1 + $0x34] ss:$8 sps:$4 sm:$0xff]   ;;  %v3968_v10 = vld [vmem:[%s5900_s1 + $0x40] ss:$8 sps:$4 sm:$0xff]  }
  0x89   : > { %1552 = vmatprep.subr.bf16.mxu1 %v3960_v50  ;;  %v5963_v50 = vpack.c.bf16 %v4365_v32, %v4362_v26  ;;  %v4833_v2 = vld [vmem:[%s4171_s30 + $0x488] sm:$0xff]  ;;  %v3969_v26 = vld [vmem:[%s5900_s1 + $0x54] ss:$8 sps:$4 sm:$0xff]   ;;  %v4845_v32 = vld [vmem:[%s4171_s30 + $0x480] sm:$0xff] }
  0x8b   : > { %1965 = vmatpush1.bf16.msra.mxu0 %v3936_v57  ;;  %v3962_v57 = vld [vmem:[%s5900_s1 + $0x20] ss:$8 sps:$4 sm:$0xff]  }
  0x8c   : > { %2127 = vmatprep.subr.bf16.mxu0 %v3941_v58  ;;  %v4805_v58 = vld [vmem:[%s4171_s30 + $0x450] sm:$0xff]  ;;  %1553 = vmatpush1.bf16.msra.mxu1 %v3962_v57  ;;  %v5964_v57 = vpack.c.bf16 %v4379_v62, %v4376_v54 }
  0x8d   : > { %1554 = vmatprep.subr.bf16.mxu1 %v3963_v11  ;;  %v4839_v11 = vld [vmem:[%s4171_s30 + $0x4c0] sm:$0xff]  ;;  %v3974_v62 = vld [vmem:[%s5900_s1 + $0x50] ss:$8 sps:$4 sm:$0xff]  }
  0x8e   : > { %1854 = vmatmul.mubr.bf16.gmra.mrb[32].mxu0 %v5961_v43  ;;  %v3965_v43 = vld [vmem:[%s5900_s1 + $0x30] ss:$8 sps:$4 sm:$0xff]  }
  0x8f   : > { %1863 = vmatprep.mubr.bf16.mxu0 %v5962_v51  ;;  %v3966_v51 = vld [vmem:[%s5900_s1 + $0x44] ss:$8 sps:$4 sm:$0xff]   ;;  %v4873_v54 = vld [vmem:[%s4171_s30 + $0x530] sm:$0xff] }
  0x90   : > { %1555 = vmatpush1.bf16.msra.mxu1 %v3965_v43  ;;  %v5966_v43 = vpack.c.bf16 %v4398_v13, %v4395_v14  ;;  %v3978_v13 = vld [vmem:[%s5900_s1 + $0x74] ss:$8 sps:$4 sm:$0xff]  }
  0x91   : > { %1556 = vmatprep.subr.bf16.mxu1 %v3966_v51  ;;  %v3975_v51 = vld [vmem:[%s5900_s1 + $0x64] ss:$8 sps:$4 sm:$0xff]   ;;  %v4881_v14 = vld [vmem:[%s4171_s30 + $0x4f0] sm:$0xff] }
  0x94   : > { %1557 = vmatpush1.bf16.msra.mxu1 %v3968_v10  ;;  %v3977_v10 = vld [vmem:[%s5900_s1 + $0x60] ss:$8 sps:$4 sm:$0xff]  }
  0x95   : > { %1558 = vmatprep.subr.bf16.mxu1 %v3969_v26  ;;  %v4870_v26 = vld [vmem:[%s4171_s30 + $0x4f8] sm:$0xff] }
  0x96   : > { %1864 = vmatmul.mubr.bf16.gmra.mrb[36].mxu0 %v5963_v50  ;;  %v4850_v50 = vld [vmem:[%s4171_s30 + $0x4b8] sm:$0xff] }
  0x97   : > { %1873 = vmatprep.mubr.bf16.mxu0 %v5964_v57  ;;  %v5965_v57 = vpack.c.bf16 %v4387_v19, %v4382_v63  ;;  %v4884_v63 = vld [vmem:[%s4171_s30 + $0x528] sm:$0xff] }
  0x98   : > { %1559 = vmatpush1.bf16.msra.mxu1 %v3974_v62  ;;  %v3980_v62 = vld [vmem:[%s5900_s1 + $0x70] ss:$8 sps:$4 sm:$0xff]   ;;  %v3983_v19 = vld [vmem:[%s5900_s1 + $0x80] ss:$8 sps:$4 sm:$0xff]  }
  0x99   : > { %1560 = vmatprep.subr.bf16.mxu1 %v3975_v51  ;;  %v3981_v51 = vld [vmem:[%s5900_s1 + $0x84] ss:$8 sps:$4 sm:$0xff]  }
  0x9c   : > { %1561 = vmatpush1.bf16.msra.mxu1 %v3977_v10  ;;  %v5968_v10 = vpack.c.bf16 %v4417_v59, %v4414_v0  ;;  %v3989_v0 = vld [vmem:[%s5900_s1 + $0x90] ss:$8 sps:$4 sm:$0xff]  }
  0x9d   : > { %1562 = vmatprep.subr.bf16.mxu1 %v3978_v13  ;;  %v4907_v13 = vld [vmem:[%s4171_s30 + $0x5a0] sm:$0xff]  ;;  %v4941_v59 = vld [vmem:[%s4171_s30 + $0x610] sm:$0xff] }
  0x9e   : > { %1874 = vmatmul.mubr.bf16.gmra.mrb[40].mxu0 %v5965_v57  ;;  %v5967_v57 = vpack.c.bf16 %v4404_v6, %v4401_v7  ;;  %v3984_v7 = vld [vmem:[%s5900_s1 + $0x94] ss:$8 sps:$4 sm:$0xff]   ;;  %v4913_v6 = vld [vmem:[%s4171_s30 + $0x560] sm:$0xff]  ;;  %5973 = vst [vmem:[#allocation14_spill] sm:$0xff] %v4941_v59 }
  0x9f   : > { %1883 = vmatprep.mubr.bf16.mxu0 %v5966_v43  ;;  %v4901_v43 = vld [vmem:[%s4171_s30 + $0x568] sm:$0xff] }
  0xa0   : > { %1563 = vmatpush1.bf16.msra.mxu1 %v3980_v62  ;;  %v5970_v62 = vld [vmem:[#allocation3_spill] sm:$0xff] }
  0xa1   : > { %1564 = vmatprep.subr.bf16.mxu1 %v3981_v51  ;;  %v3990_v51 = vld [vmem:[%s5900_s1 + $0xa4] ss:$8 sps:$4 sm:$0xff]   ;;  %v5971_v1 = vpack.c.bf16 %v4439_v46, %v5970_v62  ;;  %v3993_v46 = vld [vmem:[%s5900_s1 + $0xb4] ss:$8 sps:$4 sm:$0xff]  }
  0xa2   : > { %v4969_v62 = vld [vmem:[%s4171_s30 + $0x648] sm:$0xff] }
  0xa4   : > { %1565 = vmatpush1.bf16.msra.mxu1 %v3983_v19  ;;  %v3992_v19 = vld [vmem:[%s5900_s1 + $0xa0] ss:$8 sps:$4 sm:$0xff]  }
  0xa5   : > { %1566 = vmatprep.subr.bf16.mxu1 %v3984_v7  ;;  %v4938_v7 = vld [vmem:[%s4171_s30 + $0x5d8] sm:$0xff] }
  0xa6   : > { %1884 = vmatmul.mubr.bf16.gmra.mrb[44].mxu0 %v5967_v57  ;;  %v4918_v57 = vld [vmem:[%s4171_s30 + $0x598] sm:$0xff]  ;;  %5972 = vst [vmem:[#allocation3_spill] sm:$0xff] %v4938_v7  ;;  %v3998_v7 = vld [vmem:[%s5900_s1 + $0xc0] ss:$8 sps:$4 sm:$0xff]  }
  0xa7   : > { %1893 = vmatprep.mubr.bf16.mxu0 %v5968_v10  ;;  %v5969_v10 = vpack.c.bf16 %v4425_v55, %v4422_v56  ;;  %v4949_v56 = vld [vmem:[%s4171_s30 + $0x5d0] sm:$0xff] }
  0xa8   : > { %1567 = vmatpush1.bf16.msra.mxu1 %v3989_v0  ;;  %5974 = vst [vmem:[#allocation15_spill] sm:$0xff] %v4949_v56  ;;  %v3995_v0 = vld [vmem:[%s5900_s1 + $0xb0] ss:$8 sps:$4 sm:$0xff]   ;;  %v4975_v56 = vld [vmem:[%s4171_s30 + $0x680] sm:$0xff] }
  0xa9   : > { %1568 = vmatprep.subr.bf16.mxu1 %v3990_v51  ;;  %v5977_v51 = vld [vmem:[#allocation4_spill] sm:$0xff] }
  0xaa   : > { %5982 = vst [vmem:[#allocation4_spill] sm:$0xff] %v4975_v56 }
  0xac   : > { %1569 = vmatpush1.bf16.msra.mxu1 %v3992_v19  ;;  %v5980_v19 = vld [vmem:[#allocation6_spill] sm:$0xff] }
  0xad   : > { %1570 = vmatprep.subr.bf16.mxu1 %v3993_v46  ;;  %v5981_v46 = vpack.c.bf16 %v4458_v33, %v5980_v19  ;;  %v4004_v19 = vld [vmem:[%s5900_s1 + $0xd0] ss:$8 sps:$4 sm:$0xff]  }
  0xae   : > { %1894 = vmatmul.mubr.bf16.gmra.mrb[48].mxu0 %v5969_v10  ;;  %v5976_v10 = vld [vmem:[#allocation5_spill] sm:$0xff] }
  0xaf   : > { %1903 = vmatprep.mubr.bf16.mxu0 %v5971_v1  ;;  %v4952_v1 = vld [vmem:[%s4171_s30 + $0x608] sm:$0xff]  ;;  %v5978_v55 = vpack.c.bf16 %v5976_v10, %v5977_v51  ;;  %5979 = vst [vmem:[#allocation5_spill] sm:$0xff] %v4969_v62  ;;  %v4986_v51 = vld [vmem:[%s4171_s30 + $0x678] sm:$0xff]  ;;  %v5989_v62 = vld [vmem:[#allocation9_spill] sm:$0xff] }
  0xb0   : > { %5975 = vst [vmem:[#allocation16_spill] sm:$0xff] %v4952_v1  ;;  %1571 = vmatpush1.bf16.msra.mxu1 %v3995_v0  ;;  %v4981_v0 = vld [vmem:[%s4171_s30 + $0x640] sm:$0xff]  ;;  %5984 = vst [vmem:[#allocation17_spill] sm:$0xff] %v4986_v51  ;;  %v5988_v10 = vld [vmem:[#allocation10_spill] sm:$0xff]  ;;  %v4083_v51 = vmov 0  }
  0xb1   : > { %5983 = vst [vmem:[#allocation6_spill] sm:$0xff] %v4981_v0  ;;  %1572 = vmatprep.subr.bf16.mxu1 %v3996_v8  ;;  %v5986_v1 = vld [vmem:[#allocation7_spill] sm:$0xff]  ;;  %v5990_v33 = vpack.c.bf16 %v5988_v10, %v5989_v62  ;;  %v5017_v62 = vld [vmem:[%s4171_s30 + $0x6b0] sm:$0xff]  ;;  %v5020_v10 = vld [vmem:[%s4171_s30 + $0x6e8] sm:$0xff] }
  0xb2   : > { %v4005_v8 = vld [vmem:[%s5900_s1 + $0xe4] ss:$8 sps:$4 sm:$0xff]   ;;  %5993 = vst [vmem:[#allocation10_spill] sm:$0xff] %v5017_v62  ;;  %5994 = vst [vmem:[#allocation9_spill] sm:$0xff] %v5020_v10 }
  0xb3   : > { %v316_v0 = vld [vmem:[%s4171_s30 + $0x68] sm:$0xff]  ;;  %287 = vst.msk [vmem:[#allocation2 + $0x30] sm:$0xff] %vm286_vm0, %v4083_v51  ;;  %288 = vst.msk [vmem:[#allocation2 + $0x68] sm:$0xff] %vm286_vm0, %v4083_v51 }
  0xb4   : > { %1573 = vmatpush1.bf16.msra.mxu1 %v3998_v7  ;;  %v4007_v7 = vld [vmem:[%s5900_s1 + $0xe0] ss:$8 sps:$4 sm:$0xff]   ;;  %289 = vst.msk [vmem:[#allocation2 + $0xa0] sm:$0xff] %vm286_vm0, %v4083_v51  ;;  %290 = vst.msk [vmem:[#allocation2 + $0xd8] sm:$0xff] %vm286_vm0, %v4083_v51 }
  0xb5   : > { %291 = vst.msk [vmem:[#allocation2 + $0x110] sm:$0xff] %vm286_vm0, %v4083_v51  ;;  %292 = vst.msk [vmem:[#allocation2 + $0x148] sm:$0xff] %vm286_vm0, %v4083_v51  ;;  %v5997_v62 = vld [vmem:[#allocation12_spill] sm:$0xff] }
  0xb6   : > { %1904 = vmatmul.mubr.bf16.gmra.mrb[52].mxu0 %v5978_v55  ;;  %v3999_v55 = vld [vmem:[%s5900_s1 + $0xd4] ss:$8 sps:$4 sm:$0xff]   ;;  %293 = vst.msk [vmem:[#allocation2 + $0x180] sm:$0xff] %vm286_vm0, %v4083_v51  ;;  %294 = vst.msk [vmem:[#allocation2 + $0x1b8] sm:$0xff] %vm286_vm0, %v4083_v51  ;;  %v5998_v10 = vpack.c.bf16 %v4499_v20, %v5997_v62  ;;  %v5999_v20 = vpack.c.bf16 %v4507_v42, %v4502_v49  ;;  %v3947_v49 = vld [vmem:[%s5900_s1 + $0x324] ss:$8 sps:$4 sm:$0xff]  }
  0xb7   : > { %1913 = vmatprep.mubr.bf16.mxu0 %v5981_v46  ;;  %1574 = vmatprep.subr.bf16.mxu1 %v3999_v55  ;;  %v5985_v46 = vld [vmem:[#allocation8_spill] sm:$0xff]  ;;  %v5006_v55 = vld [vmem:[%s4171_s30 + $0x6b8] sm:$0xff]  ;;  %295 = vst.msk [vmem:[#allocation2 + $0x1f0] sm:$0xff] %vm286_vm0, %v4083_v51  ;;  %296 = vst.msk [vmem:[#allocation2 + $0x228] sm:$0xff] %vm286_vm0, %v4083_v51 }
  0xb8   : > { %v5987_v59 = vpack.c.bf16 %v5985_v46, %v5986_v1  ;;  %1575 = vmatpush1.bf16.msra.mxu1 %v4004_v19  ;;  %5991 = vst [vmem:[#allocation8_spill] sm:$0xff] %v5006_v55  ;;  %v5009_v1 = vld [vmem:[%s4171_s30 + $0x6f0] sm:$0xff]  ;;  %v304_v55 = vld [vmem:[%s4171_s30 + $0x8] sm:$0xff]  ;;  %297 = vst.msk [vmem:[#allocation2 + $0x260] sm:$0xff] %vm286_vm0, %v4083_v51 }
  0xb9   : > { %5992 = vst [vmem:[#allocation7_spill] sm:$0xff] %v5009_v1  ;;  %1576 = vmatprep.subr.bf16.mxu1 %v4005_v8  ;;  %v4008_v19 = vld [vmem:[%s5900_s1 + $0xf4] ss:$8 sps:$4 sm:$0xff]   ;;  %v4010_v8 = vld [vmem:[%s5900_s1 + $0xf0] ss:$8 sps:$4 sm:$0xff]   ;;  %v311_v1 = vld [vmem:[%s4171_s30 + $0x40] sm:$0xff] }
  0xba   : > { %v309_v46 = vld [vmem:[%s4171_s30 + $0x30] sm:$0xff]  ;;  %298 = vst.msk [vmem:[#allocation2 + $0x298] sm:$0xff] %vm286_vm0, %v4083_v51  ;;  %299 = vst.msk [vmem:[#allocation2 + $0x2d0] sm:$0xff] %vm286_vm0, %v4083_v51 }
  0xbb   : > { %300 = vst.msk [vmem:[#allocation2 + $0x308] sm:$0xff] %vm286_vm0, %v4083_v51  ;;  %301 = vst.msk [vmem:[#allocation2 + $0x340] sm:$0xff] %vm286_vm0, %v4083_v51  ;;  %v317_v62 = vld [vmem:[%s4171_s30 + $0x70] sm:$0xff] }
  0xbc   : > { %1577 = vmatpush1.bf16.msra.mxu1 %v4007_v7  ;;  %302 = vst.msk [vmem:[#allocation2 + $0x378] sm:$0xff] %vm286_vm0, %v4083_v51 }
  0xbd   : > { %1578 = vmatprep.subr.bf16.mxu1 %v4008_v19  ;;  %v528_v19 = vpack.c.bf16 %v311_v1, %v304_v55  ;;  %v3944_v55 = vld [vmem:[%s5900_s1 + $0x314] ss:$8 sps:$4 sm:$0xff]  }
  0xbe   : > { %1914 = vmatmul.mubr.bf16.gmra.mrb[56].mxu0 %v5987_v59  ;;  %v533_v59 = vpack.c.bf16 %v316_v0, %v309_v46  ;;  %v5995_v0 = vld [vmem:[#allocation11_spill] sm:$0xff] }
  0xbf   : > { %1923 = vmatprep.mubr.bf16.mxu0 %v5990_v33  ;;  %v5996_v7 = vpack.c.bf16 %v4485_v41, %v5995_v0  ;;  %v303_v46 = vld [vmem:[%s4171_s30] sm:$0xff]  ;;  %v310_v33 = vld [vmem:[%s4171_s30 + $0x38] sm:$0xff]  ;;  %1580 = vmatprep.mubr.bf16.mxu1 %v528_v19 }
  0xc0   : > { %1579 = vmatpush1.bf16.msra.mxu1 %v4010_v8  ;;  %646 = vst.msk [vmem:[#allocation2 + $0x30] sm:$0xff] %vm645_vm1, %v533_v59  ;;  %v527_v56 = vpack.c.bf16 %v310_v33, %v303_v46  ;;  %v3939_v41 = vld [vmem:[%s5900_s1 + $0x300] ss:$8 sps:$4 sm:$0xff]   ;;  %v330_v8 = vld [vmem:[%s4171_s30 + $0xd8] sm:$0xff]  ;;  %v325_v59 = vld [vmem:[%s4171_s30 + $0xb0] sm:$0xff] }
  0xc1   : > { %v323_v0 = vld [vmem:[%s4171_s30 + $0xa0] sm:$0xff]  ;;  %v6000_v33 = vld [vmem:[#allocation13_spill] sm:$0xff] }
  0xc2   : > { %v540_v1 = vpack.c.bf16 %v330_v8, %v323_v0  ;;  %v6001_v19 = vpack.c.bf16 %v4527_v17, %v6000_v33  ;;  %v3942_v46 = vld [vmem:[%s5900_s1 + $0x310] ss:$8 sps:$4 sm:$0xff]   ;;  %v3945_v17 = vld [vmem:[%s5900_s1 + $0x320] ss:$8 sps:$4 sm:$0xff]   ;;  %v3950_v8 = vld [vmem:[%s5900_s1 + $0x334] ss:$8 sps:$4 sm:$0xff]  }
  0xc3   : > { %1581 = vmatmul.mubr.bf16.vlgmr.msra.gmra.mrb[0].mxu1 %v527_v56  ;;  %v344_v0 = vld [vmem:[%s4171_s30 + $0x148] sm:$0xff]  ;;  %v3948_v33 = vld [vmem:[%s5900_s1 + $0x330] ss:$8 sps:$4 sm:$0xff]  }
  0xc4   : > { %653 = vst.msk [vmem:[#allocation2 + $0x68] sm:$0xff] %vm645_vm1, %v540_v1  ;;  %v332_v1 = vld [vmem:[%s4171_s30 + $0xe8] sm:$0xff] }
  0xc6   : > { %1924 = vmatmul.mubr.bf16.gmra.mrb[60].mxu0 %v5996_v7  ;;  %v318_v7 = vld [vmem:[%s4171_s30 + $0x78] sm:$0xff] }
  0xc7   : > { %1966 = vmatprep.mubr.bf16.mxu0 %v5998_v10  ;;  %v535_v56 = vpack.c.bf16 %v325_v59, %v318_v7  ;;  %v324_v10 = vld [vmem:[%s4171_s30 + $0xa8] sm:$0xff]  ;;  %v339_v7 = vld [vmem:[%s4171_s30 + $0x120] sm:$0xff]  ;;  %v6002_v59 = vpack.c.bf16 %v4535_v12, %v4530_v34 }
  0xc8   : > { %v534_v42 = vpack.c.bf16 %v324_v10, %v317_v62  ;;  %v338_v62 = vld [vmem:[%s4171_s30 + $0x118] sm:$0xff]  ;;  %v6003_v10 = vpack.c.bf16 %v4558_v22, %v4555_v16  ;;  %v3958_v34 = vld [vmem:[%s5900_s1 + $0x344] ss:$8 sps:$4 sm:$0xff]   ;;  %v3956_v16 = vld [vmem:[%s5900_s1 + $0x340] ss:$8 sps:$4 sm:$0xff]  }
  0xc9   : > { %1590 = vmatprep.mubr.bf16.mxu1 %v535_v56  ;;  %v331_v56 = vld [vmem:[%s4171_s30 + $0xe0] sm:$0xff] }
  0xca   : > { %v541_v12 = vpack.c.bf16 %v338_v62, %v331_v56  ;;  %v351_v22 = vld [vmem:[%s4171_s30 + $0x180] sm:$0xff]  ;;  %v360_v62 = vld [vmem:[%s4171_s30 + $0x1c8] sm:$0xff] }
  0xcb   : > { %1591 = vmatmul.mubr.bf16.gmra.mrb[4].mxu1 %v534_v42 }
  0xce   : > { %1967 = vmatmul.mubr.bf16.vlgmr.msra.gmra.mrb[0].mxu0 %v5999_v20  ;;  %v542_v20 = vpack.c.bf16 %v339_v7, %v332_v1  ;;  %v6005_v1 = vpack.c.bf16 %v4595_v37, %v4589_v40  ;;  %v3971_v7 = vld [vmem:[%s5900_s1 + $0x350] ss:$8 sps:$4 sm:$0xff]   ;;  %v3986_v40 = vld [vmem:[%s5900_s1 + $0x360] ss:$8 sps:$4 sm:$0xff]  }
  0xcf   : > { %2128 = vmatpush1.bf16.msra.mxu0 %v3939_v41  ;;  %1976 = vmatprep.mubr.bf16.mxu0 %v6001_v19  ;;  %v337_v41 = vld [vmem:[%s4171_s30 + $0x110] sm:$0xff]  ;;  %v358_v19 = vld [vmem:[%s4171_s30 + $0x1b8] sm:$0xff] }
  0xd0   : > { %2129 = vmatprep.subr.bf16.mxu0 %v3944_v55  ;;  %v547_v55 = vpack.c.bf16 %v344_v0, %v337_v41  ;;  %1600 = vmatprep.mubr.bf16.mxu1 %v542_v20  ;;  %v554_v42 = vpack.c.bf16 %v358_v19, %v351_v22  ;;  %v6004_v41 = vpack.c.bf16 %v4569_v25, %v4566_v23  ;;  %v3988_v25 = vld [vmem:[%s5900_s1 + $0x364] ss:$8 sps:$4 sm:$0xff]   ;;  %v365_v37 = vld [vmem:[%s4171_s30 + $0x1f0] sm:$0xff] }
  0xd1   : > { %v4003_v20 = vld [vmem:[%s5900_s1 + $0x374] ss:$8 sps:$4 sm:$0xff]   ;;  %v6007_v22 = vpack.c.bf16 %v4626_v4, %v4623_v21  ;;  %v4001_v19 = vld [vmem:[%s5900_s1 + $0x370] ss:$8 sps:$4 sm:$0xff]  }
  0xd2   : > { %660 = vst.msk [vmem:[#allocation2 + $0xa0] sm:$0xff] %vm645_vm1, %v547_v55  ;;  %v352_v55 = vld [vmem:[%s4171_s30 + $0x188] sm:$0xff]  ;;  %667 = vst.msk [vmem:[#allocation2 + $0xd8] sm:$0xff] %vm645_vm1, %v554_v42  ;;  %v374_v4 = vld [vmem:[%s4171_s30 + $0x238] sm:$0xff] }
  0xd3   : > { %2130 = vmatpush1.bf16.msra.mxu0 %v3942_v46  ;;  %1601 = vmatmul.mubr.bf16.gmra.mrb[8].mxu1 %v541_v12  ;;  %v3973_v46 = vld [vmem:[%s5900_s1 + $0x354] ss:$8 sps:$4 sm:$0xff]  }
  0xd4   : > { %2131 = vmatprep.subr.bf16.mxu0 %v3947_v49  ;;  %v346_v49 = vld [vmem:[%s4171_s30 + $0x158] sm:$0xff]  ;;  %v381_v21 = vld [vmem:[%s4171_s30 + $0x270] sm:$0xff] }
  0xd6   : > { %1977 = vmatmul.mubr.bf16.gmra.mrb[4].mxu0 %v6002_v59  ;;  %v372_v59 = vld [vmem:[%s4171_s30 + $0x228] sm:$0xff] }
  0xd7   : > { %1986 = vmatprep.mubr.bf16.mxu0 %v6003_v10  ;;  %2132 = vmatpush1.bf16.msra.mxu0 %v3945_v17  ;;  %v353_v17 = vld [vmem:[%s4171_s30 + $0x190] sm:$0xff]  ;;  %v561_v56 = vpack.c.bf16 %v372_v59, %v365_v37  ;;  %v367_v10 = vld [vmem:[%s4171_s30 + $0x200] sm:$0xff]  ;;  %v6011_v37 = vpack.c.bf16 %v4694_v29, %v4691_v35  ;;  %v408_v35 = vld [vmem:[%s4171_s30 + $0x348] sm:$0xff] }
  0xd8   : > { %2133 = vmatprep.subr.bf16.mxu0 %v3950_v8  ;;  %v549_v0 = vpack.c.bf16 %v353_v17, %v346_v49  ;;  %v345_v8 = vld [vmem:[%s4171_s30 + $0x150] sm:$0xff]  ;;  %v556_v12 = vpack.c.bf16 %v367_v10, %v360_v62  ;;  %v6008_v49 = vpack.c.bf16 %v4637_v39, %v4634_v38  ;;  %v563_v17 = vpack.c.bf16 %v381_v21, %v374_v4  ;;  %v388_v39 = vld [vmem:[%s4171_s30 + $0x2a8] sm:$0xff]  ;;  %v435_v4 = vld [vmem:[%s4171_s30 + $0x420] sm:$0xff] }
  0xd9   : > { %v548_v23 = vpack.c.bf16 %v352_v55, %v345_v8  ;;  %674 = vst.msk [vmem:[#allocation2 + $0x110] sm:$0xff] %vm645_vm1, %v561_v56  ;;  %v6009_v8 = vpack.c.bf16 %v4663_v24, %v4657_v28  ;;  %v387_v28 = vld [vmem:[%s4171_s30 + $0x2a0] sm:$0xff]  ;;  %v394_v24 = vld [vmem:[%s4171_s30 + $0x2d8] sm:$0xff]  ;;  %v409_v62 = vld [vmem:[%s4171_s30 + $0x350] sm:$0xff]  ;;  %v6012_v10 = vpack.c.bf16 %v4705_v48, %v4702_v53 }
  0xda   : > { %1610 = vmatprep.mubr.bf16.mxu1 %v549_v0  ;;  %v380_v0 = vld [vmem:[%s4171_s30 + $0x268] sm:$0xff]  ;;  %v569_v59 = vpack.c.bf16 %v394_v24, %v387_v28  ;;  %v414_v56 = vld [vmem:[%s4171_s30 + $0x378] sm:$0xff]  ;;  %v401_v29 = vld [vmem:[%s4171_s30 + $0x310] sm:$0xff] }
  0xdb   : > { %2134 = vmatpush1.bf16.msra.mxu0 %v3948_v33  ;;  %1611 = vmatmul.mubr.bf16.gmra.mrb[12].mxu1 %v548_v23  ;;  %v6006_v33 = vpack.c.bf16 %v4601_v31, %v4598_v30  ;;  %v379_v31 = vld [vmem:[%s4171_s30 + $0x260] sm:$0xff]  ;;  %v416_v48 = vld [vmem:[%s4171_s30 + $0x388] sm:$0xff]  ;;  %v442_v21 = vld [vmem:[%s4171_s30 + $0x458] sm:$0xff] }
  0xdc   : > { %2135 = vmatprep.subr.bf16.mxu0 %v3958_v34  ;;  %v359_v34 = vld [vmem:[%s4171_s30 + $0x1c0] sm:$0xff]  ;;  %1620 = vmatprep.mubr.bf16.mxu1 %v556_v12  ;;  %v6013_v12 = vpack.c.bf16 %v4728_v27, %v4722_v36  ;;  %v422_v27 = vld [vmem:[%s4171_s30 + $0x3b8] sm:$0xff]  ;;  %v465_v24 = vld [vmem:[%s4171_s30 + $0x510] sm:$0xff] }
  0xdd   : > { %v395_v23 = vld [vmem:[%s4171_s30 + $0x2e0] sm:$0xff]  ;;  %v470_v28 = vld [vmem:[%s4171_s30 + $0x538] sm:$0xff] }
  0xde   : > { %1987 = vmatmul.mubr.bf16.gmra.mrb[8].mxu0 %v6004_v41  ;;  %v373_v41 = vld [vmem:[%s4171_s30 + $0x230] sm:$0xff]  ;;  %v415_v36 = vld [vmem:[%s4171_s30 + $0x380] sm:$0xff] }
  0xdf   : > { %1996 = vmatprep.mubr.bf16.mxu0 %v6005_v1  ;;  %2136 = vmatpush1.bf16.msra.mxu0 %v3956_v16  ;;  %v366_v16 = vld [vmem:[%s4171_s30 + $0x1f8] sm:$0xff]  ;;  %v562_v55 = vpack.c.bf16 %v380_v0, %v373_v41  ;;  %v393_v1 = vld [vmem:[%s4171_s30 + $0x2d0] sm:$0xff]  ;;  %v6017_v0 = vpack.c.bf16 %v4805_v58, %v4802_v3  ;;  %v443_v3 = vld [vmem:[%s4171_s30 + $0x460] sm:$0xff] }
  0xe0   : > { %2137 = vmatprep.subr.bf16.mxu0 %v3973_v46  ;;  %v555_v30 = vpack.c.bf16 %v366_v16, %v359_v34  ;;  %v386_v46 = vld [vmem:[%s4171_s30 + $0x298] sm:$0xff]  ;;  %v576_v34 = vpack.c.bf16 %v408_v35, %v401_v29  ;;  %v421_v16 = vld [vmem:[%s4171_s30 + $0x3b0] sm:$0xff]  ;;  %v471_v29 = vld [vmem:[%s4171_s30 + $0x540] sm:$0xff]  ;;  %v6023_v35 = vpack.c.bf16 %v4907_v13, %v4901_v43  ;;  %v6024_v43 = vpack.c.bf16 %v4918_v57, %v4913_v6 }
  0xe1   : > { %v568_v42 = vpack.c.bf16 %v386_v46, %v379_v31  ;;  %v6015_v46 = vpack.c.bf16 %v4768_v61, %v4762_v60  ;;  %v429_v61 = vld [vmem:[%s4171_s30 + $0x3f0] sm:$0xff]  ;;  %v436_v60 = vld [vmem:[%s4171_s30 + $0x428] sm:$0xff]  ;;  %v450_v58 = vld [vmem:[%s4171_s30 + $0x498] sm:$0xff] }
  0xe2   : > { %v4016_v6 = vld [vmem:[%s5902_s3 + $0x14] ss:$8 sps:$4 sm:$0xff]  }
  0xe3   : > { %2138 = vmatpush1.bf16.msra.mxu0 %v3971_v7  ;;  %1621 = vmatmul.mubr.bf16.gmra.mrb[16].mxu1 %v555_v30  ;;  %681 = vst.msk [vmem:[#allocation2 + $0x148] sm:$0xff] %vm645_vm1, %v568_v42  ;;  %v400_v7 = vld [vmem:[%s4171_s30 + $0x308] sm:$0xff]  ;;  %v6014_v30 = vpack.c.bf16 %v4734_v52, %v4731_v44  ;;  %v583_v42 = vpack.c.bf16 %v422_v27, %v415_v36  ;;  %v430_v44 = vld [vmem:[%s4171_s30 + $0x3f8] sm:$0xff]  ;;  %v6026_v36 = vld [vmem:[#allocation3_spill] sm:$0xff] }
  0xe4   : > { %2139 = vmatprep.subr.bf16.mxu0 %v3988_v25  ;;  %1630 = vmatprep.mubr.bf16.mxu1 %v563_v17  ;;  %v575_v38 = vpack.c.bf16 %v400_v7, %v393_v1  ;;  %v6010_v25 = vpack.c.bf16 %v4669_v47, %v4666_v45  ;;  %v402_v47 = vld [vmem:[%s4171_s30 + $0x318] sm:$0xff]  ;;  %v596_v52 = vpack.c.bf16 %v442_v21, %v435_v4  ;;  %v456_v1 = vld [vmem:[%s4171_s30 + $0x4c8] sm:$0xff]  ;;  %v451_v7 = vld [vmem:[%s4171_s30 + $0x4a0] sm:$0xff] }
  0xe5   : > { %v6016_v17 = vpack.c.bf16 %v4782_v9, %v4774_v5  ;;  %v444_v9 = vld [vmem:[%s4171_s30 + $0x468] sm:$0xff]  ;;  %v505_v57 = vld [vmem:[%s4171_s30 + $0x650] sm:$0xff] }
  0xe6   : > { %1997 = vmatmul.mubr.bf16.gmra.mrb[12].mxu0 %v6006_v33  ;;  %688 = vst.msk [vmem:[#allocation2 + $0x180] sm:$0xff] %vm645_vm1, %v575_v38  ;;  %v577_v33 = vpack.c.bf16 %v409_v62, %v402_v47  ;;  %709 = vst.msk [vmem:[#allocation2 + $0x228] sm:$0xff] %vm645_vm1, %v596_v52  ;;  %v6018_v38 = vpack.c.bf16 %v4816_v18, %v4813_v15  ;;  %v458_v18 = vld [vmem:[%s4171_s30 + $0x4d8] sm:$0xff]  ;;  %v484_v47 = vld [vmem:[%s4171_s30 + $0x5a8] sm:$0xff] }
  0xe7   : > { %2006 = vmatprep.mubr.bf16.mxu0 %v6007_v22  ;;  %2140 = vmatpush1.bf16.msra.mxu0 %v3986_v40  ;;  %v570_v40 = vpack.c.bf16 %v395_v23, %v388_v39  ;;  %v428_v22 = vld [vmem:[%s4171_s30 + $0x3e8] sm:$0xff]  ;;  %v598_v39 = vpack.c.bf16 %v451_v7, %v444_v9  ;;  %v6019_v23 = vpack.c.bf16 %v4839_v11, %v4833_v2  ;;  %v457_v2 = vld [vmem:[%s4171_s30 + $0x4d0] sm:$0xff]  ;;  %v507_v52 = vld [vmem:[%s4171_s30 + $0x660] sm:$0xff] }
  0xe8   : > { %2141 = vmatprep.subr.bf16.mxu0 %v4003_v20  ;;  %v407_v20 = vld [vmem:[%s4171_s30 + $0x340] sm:$0xff]  ;;  %v589_v53 = vpack.c.bf16 %v428_v22, %v421_v16  ;;  %v464_v11 = vld [vmem:[%s4171_s30 + $0x508] sm:$0xff]  ;;  %v486_v22 = vld [vmem:[%s4171_s30 + $0x5b8] sm:$0xff] }
  0xe9   : > { %v582_v45 = vpack.c.bf16 %v414_v56, %v407_v20  ;;  %v6021_v20 = vpack.c.bf16 %v4873_v54, %v4870_v26  ;;  %v604_v56 = vpack.c.bf16 %v464_v11, %v457_v2  ;;  %v478_v54 = vld [vmem:[%s4171_s30 + $0x578] sm:$0xff]  ;;  %v4011_v26 = vld [vmem:[%s5902_s3] ss:$8 sps:$4 sm:$0xff]   ;;  %v4019_v9 = vld [vmem:[%s5902_s3 + $0x24] ss:$8 sps:$4 sm:$0xff]  }
  0xea   : > { %702 = vst.msk [vmem:[#allocation2 + $0x1f0] sm:$0xff] %vm645_vm1, %v589_v53  ;;  %v493_v53 = vld [vmem:[%s4171_s30 + $0x5f0] sm:$0xff]  ;;  %v500_v21 = vld [vmem:[%s4171_s30 + $0x628] sm:$0xff]  ;;  %v519_v7 = vld [vmem:[%s4171_s30 + $0x6c0] sm:$0xff] }
  0xeb   : > { %2142 = vmatpush1.bf16.msra.mxu0 %v4001_v19  ;;  %1631 = vmatmul.mubr.bf16.gmra.mrb[20].mxu1 %v562_v55  ;;  %695 = vst.msk [vmem:[#allocation2 + $0x1b8] sm:$0xff] %vm645_vm1, %v582_v45  ;;  %v423_v19 = vld [vmem:[%s4171_s30 + $0x3c0] sm:$0xff]  ;;  %v449_v55 = vld [vmem:[%s4171_s30 + $0x490] sm:$0xff]  ;;  %v619_v13 = vpack.c.bf16 %v493_v53, %v486_v22 }
  0xec   : > { %1640 = vmatprep.mubr.bf16.mxu1 %v570_v40  ;;  %v584_v31 = vpack.c.bf16 %v423_v19, %v416_v48  ;;  %v603_v5 = vpack.c.bf16 %v456_v1, %v449_v55  ;;  %v463_v40 = vld [vmem:[%s4171_s30 + $0x500] sm:$0xff]  ;;  %v477_v45 = vld [vmem:[%s4171_s30 + $0x570] sm:$0xff]  ;;  %v492_v19 = vld [vmem:[%s4171_s30 + $0x5e8] sm:$0xff] }
  0xed   : > { %v610_v15 = vpack.c.bf16 %v470_v28, %v463_v40  ;;  %v617_v62 = vpack.c.bf16 %v484_v47, %v477_v45  ;;  %v485_v48 = vld [vmem:[%s4171_s30 + $0x5b0] sm:$0xff]  ;;  %v6041_v45 = vld [vmem:[#allocation10_spill] sm:$0xff]  ;;  %v4043_v22 = vld [vmem:[%s5902_s3 + $0xa4] ss:$8 sps:$4 sm:$0xff]  }
  0xee   : > { %2007 = vmatmul.mubr.bf16.gmra.mrb[16].mxu0 %v6008_v49  ;;  %v437_v49 = vld [vmem:[%s4171_s30 + $0x430] sm:$0xff]  ;;  %716 = vst.msk [vmem:[#allocation2 + $0x260] sm:$0xff] %vm645_vm1, %v603_v5  ;;  %v772_v53 = vld [vmem:[#allocation2 + $0xa0] sm:$0xff] }
  0xef   : > { %2016 = vmatprep.mubr.bf16.mxu0 %v6009_v8  ;;  %v591_v41 = vpack.c.bf16 %v437_v49, %v430_v44  ;;  %v590_v8 = vpack.c.bf16 %v436_v60, %v429_v61  ;;  %723 = vst.msk [vmem:[#allocation2 + $0x298] sm:$0xff] %vm645_vm1, %v610_v15  ;;  %730 = vst.msk [vmem:[#allocation2 + $0x2d0] sm:$0xff] %vm645_vm1, %v617_v62  ;;  %v6028_v44 = vld [vmem:[#allocation16_spill] sm:$0xff]  ;;  %v6029_v49 = vld [vmem:[#allocation15_spill] sm:$0xff] }
  0xf0   : > { %v499_v61 = vld [vmem:[%s4171_s30 + $0x620] sm:$0xff]  ;;  %v506_v60 = vld [vmem:[%s4171_s30 + $0x658] sm:$0xff]  ;;  %v6032_v55 = vld [vmem:[#allocation5_spill] sm:$0xff] }
  0xf1   : > { %v625_v5 = vpack.c.bf16 %v506_v60, %v499_v61  ;;  %v513_v15 = vld [vmem:[%s4171_s30 + $0x690] sm:$0xff]  ;;  %v4023_v62 = vld [vmem:[%s5902_s3 + $0x40] ss:$8 sps:$4 sm:$0xff]  }
  0xf3   : > { %1641 = vmatmul.mubr.bf16.gmra.mrb[24].mxu1 %v569_v59  ;;  %v605_v59 = vpack.c.bf16 %v465_v24, %v458_v18  ;;  %v520_v18 = vld [vmem:[%s4171_s30 + $0x6c8] sm:$0xff]  ;;  %v4020_v24 = vld [vmem:[%s5902_s3 + $0x30] ss:$8 sps:$4 sm:$0xff]  }
  0xf4   : > { %1650 = vmatprep.mubr.bf16.mxu1 %v577_v33  ;;  %v632_v11 = vpack.c.bf16 %v520_v18, %v513_v15 }
  0xf6   : > { %2017 = vmatmul.mubr.bf16.gmra.mrb[20].mxu0 %v6010_v25  ;;  %v597_v25 = vpack.c.bf16 %v450_v58, %v443_v3  ;;  %v514_v3 = vld [vmem:[%s4171_s30 + $0x698] sm:$0xff]  ;;  %v521_v58 = vld [vmem:[%s4171_s30 + $0x6d0] sm:$0xff] }
  0xf7   : > { %2026 = vmatprep.mubr.bf16.mxu0 %v6011_v37  ;;  %v6020_v37 = vpack.c.bf16 %v4850_v50, %v4845_v32  ;;  %v472_v32 = vld [vmem:[%s4171_s30 + $0x548] sm:$0xff]  ;;  %v479_v50 = vld [vmem:[%s4171_s30 + $0x580] sm:$0xff]  ;;  %v633_v28 = vpack.c.bf16 %v521_v58, %v514_v3 }
  0xf8   : > { %v612_v33 = vpack.c.bf16 %v479_v50, %v472_v32  ;;  %v4025_v32 = vld [vmem:[%s5902_s3 + $0x44] ss:$8 sps:$4 sm:$0xff]   ;;  %v4028_v50 = vld [vmem:[%s5902_s3 + $0x54] ss:$8 sps:$4 sm:$0xff]  }
  0xfb   : > { %1651 = vmatmul.mubr.bf16.gmra.mrb[28].mxu1 %v576_v34  ;;  %v498_v34 = vld [vmem:[%s4171_s30 + $0x618] sm:$0xff] }
  0xfc   : > { %1660 = vmatprep.mubr.bf16.mxu1 %v584_v31  ;;  %v6025_v31 = vld [vmem:[#allocation14_spill] sm:$0xff] }
  0xfd   : > { %v6027_v27 = vpack.c.bf16 %v6025_v31, %v6026_v36  ;;  %v4047_v31 = vld [vmem:[%s5902_s3 + $0xc0] ss:$8 sps:$4 sm:$0xff]   ;;  %v4052_v36 = vld [vmem:[%s5902_s3 + $0xd4] ss:$8 sps:$4 sm:$0xff]  }
  0xfe   : > { %2027 = vmatmul.mubr.bf16.gmra.mrb[24].mxu0 %v6012_v10  ;;  %v6022_v10 = vpack.c.bf16 %v4884_v63, %v4881_v14  ;;  %v4013_v14 = vld [vmem:[%s5902_s3 + $0x4] ss:$8 sps:$4 sm:$0xff]  }
  0xff   : > { %2036 = vmatprep.mubr.bf16.mxu0 %v6013_v12  ;;  %v611_v12 = vpack.c.bf16 %v478_v54, %v471_v29  ;;  %2620 = vmatprep.subr.bf16.mxu1 %v4013_v14  ;;  %v491_v63 = vld [vmem:[%s4171_s30 + $0x5e0] sm:$0xff]  ;;  %v758_v29 = vld [vmem:[#allocation2 + $0x30] sm:$0xff]  ;;  %v765_v14 = vld [vmem:[#allocation2 + $0x68] sm:$0xff] }
 0x100   : > { %2621 = vmatpush1.bf16.msra.mxu1 %v4011_v26  ;;  %v624_v16 = vpack.c.bf16 %v498_v34, %v491_v63  ;;  %v4029_v54 = vld [vmem:[%s5902_s3 + $0x60] ss:$8 sps:$4 sm:$0xff]   ;;  %v4034_v26 = vld [vmem:[%s5902_s3 + $0x74] ss:$8 sps:$4 sm:$0xff]  }
 0x101   : > { %2622 = vmatprep.subr.bf16.mxu1 %v4016_v6  ;;  %v4035_v63 = vld [vmem:[%s5902_s3 + $0x80] ss:$8 sps:$4 sm:$0xff]   ;;  %v4040_v34 = vld [vmem:[%s5902_s3 + $0x94] ss:$8 sps:$4 sm:$0xff]  }
 0x102   : > { %737 = vst.msk [vmem:[#allocation2 + $0x308] sm:$0xff] %vm645_vm1, %v624_v16  ;;  %v4038_v16 = vld [vmem:[%s5902_s3 + $0x90] ss:$8 sps:$4 sm:$0xff]  }
 0x103   : > { %1661 = vmatmul.mubr.bf16.gmra.mrb[32].mxu1 %v583_v42  ;;  %v512_v42 = vld [vmem:[%s4171_s30 + $0x688] sm:$0xff]  ;;  %v786_v6 = vld [vmem:[#allocation2 + $0x110] sm:$0xff] }
 0x104   : > { %1670 = vmatprep.mubr.bf16.mxu1 %v591_v41  ;;  %v631_v4 = vpack.c.bf16 %v512_v42, %v505_v57  ;;  %v626_v41 = vpack.c.bf16 %v507_v52, %v500_v21  ;;  %v4053_v57 = vld [vmem:[%s5902_s3 + $0xe0] ss:$8 sps:$4 sm:$0xff]   ;;  %v807_v21 = vld [vmem:[#allocation2 + $0x1b8] sm:$0xff]  ;;  %v814_v52 = vld [vmem:[#allocation2 + $0x1f0] sm:$0xff] }
 0x105   : > { %v793_v42 = vld [vmem:[#allocation2 + $0x148] sm:$0xff] }
 0x106   : > { %2037 = vmatmul.mubr.bf16.gmra.mrb[28].mxu0 %v6014_v30  ;;  %v4014_v30 = vld [vmem:[%s5902_s3 + $0x10] ss:$8 sps:$4 sm:$0xff]   ;;  %744 = vst.msk [vmem:[#allocation2 + $0x340] sm:$0xff] %vm645_vm1, %v631_v4  ;;  %v800_v4 = vld [vmem:[#allocation2 + $0x180] sm:$0xff] }
 0x107   : > { %2046 = vmatprep.mubr.bf16.mxu0 %v6015_v46  ;;  %v618_v46 = vpack.c.bf16 %v492_v19, %v485_v48  ;;  %2623 = vmatpush1.bf16.msra.mxu1 %v4014_v30  ;;  %v4044_v48 = vld [vmem:[%s5902_s3 + $0xb0] ss:$8 sps:$4 sm:$0xff]   ;;  %v4049_v19 = vld [vmem:[%s5902_s3 + $0xc4] ss:$8 sps:$4 sm:$0xff]  }
 0x108   : > { %2624 = vmatprep.subr.bf16.mxu1 %v4019_v9  ;;  %v779_v30 = vld [vmem:[#allocation2 + $0xd8] sm:$0xff] }
 0x109   : > { %v4056_v9 = vld [vmem:[%s5902_s3 + $0xf0] ss:$8 sps:$4 sm:$0xff]  }
 0x10b   : > { %1671 = vmatmul.mubr.bf16.gmra.mrb[36].mxu1 %v590_v8  ;;  %v6031_v8 = vld [vmem:[#allocation4_spill] sm:$0xff] }
 0x10c   : > { %1680 = vmatprep.mubr.bf16.mxu1 %v598_v39  ;;  %v6033_v1 = vpack.c.bf16 %v6031_v8, %v6032_v55 }
 0x10e   : > { %2047 = vmatmul.mubr.bf16.gmra.mrb[32].mxu0 %v6016_v17  ;;  %v6030_v17 = vpack.c.bf16 %v6028_v44, %v6029_v49  ;;  %v821_v44 = vld [vmem:[#allocation2 + $0x228] sm:$0xff]  ;;  %v828_v49 = vld [vmem:[#allocation2 + $0x260] sm:$0xff] }
 0x10f   : > { %2056 = vmatprep.mubr.bf16.mxu0 %v6017_v0  ;;  %v4017_v0 = vld [vmem:[%s5902_s3 + $0x20] ss:$8 sps:$4 sm:$0xff]  }
 0x110   : > { %2625 = vmatpush1.bf16.msra.mxu1 %v4017_v0  ;;  %v835_v0 = vld [vmem:[#allocation2 + $0x298] sm:$0xff] }
 0x113   : > { %1681 = vmatmul.mubr.bf16.gmra.mrb[40].mxu1 %v597_v25  ;;  %v6035_v25 = vld [vmem:[#allocation6_spill] sm:$0xff] }
 0x114   : > { %1690 = vmatprep.mubr.bf16.mxu1 %v605_v59  ;;  %v6038_v59 = vld [vmem:[#allocation8_spill] sm:$0xff] }
 0x116   : > { %2057 = vmatmul.mubr.bf16.gmra.mrb[36].mxu0 %v6018_v38  ;;  %v526_v38 = vld [vmem:[%s4171_s30 + $0x6f8] sm:$0xff]  ;;  %s3301_s30 = sshll.u32 %s6084_s11, 3 }
 0x117   : > { %2066 = vmatprep.mubr.bf16.mxu0 %v6019_v23  ;;  %v638_v39 = vpack.c.bf16 %v526_v38, %v519_v7  ;;  %v6034_v23 = vld [vmem:[#allocation17_spill] sm:$0xff]  ;;  %s5830_s10 = scalar_lea.vmem %s5906_s7, %s3301_s30 }
 0x118   : > { %v6036_v40 = vpack.c.bf16 %v6034_v23, %v6035_v25  ;;  %v842_v38 = vld [vmem:[#allocation2 + $0x2d0] sm:$0xff]  ;;  %v849_v25 = vld [vmem:[#allocation2 + $0x308] sm:$0xff] }
 0x119   : > { %751 = vst.msk [vmem:[#allocation2 + $0x378] sm:$0xff] %vm645_vm1, %v638_v39 }
 0x11b   : > { %1691 = vmatmul.mubr.bf16.gmra.mrb[44].mxu1 %v604_v56  ;;  %v6040_v56 = vld [vmem:[#allocation9_spill] sm:$0xff] }
 0x11c   : > { %1700 = vmatprep.mubr.bf16.mxu1 %v612_v33  ;;  %v6042_v47 = vpack.c.bf16 %v6040_v56, %v6041_v45  ;;  %v4031_v33 = vld [vmem:[%s5902_s3 + $0x64] ss:$8 sps:$4 sm:$0xff]  }
 0x11e   : > { %2067 = vmatmul.mubr.bf16.gmra.mrb[40].mxu0 %v6020_v37  ;;  %v6037_v37 = vld [vmem:[#allocation7_spill] sm:$0xff] }
 0x11f   : > { %2076 = vmatprep.mubr.bf16.mxu0 %v6021_v20  ;;  %v6039_v2 = vpack.c.bf16 %v6037_v37, %v6038_v59  ;;  %v4022_v20 = vld [vmem:[%s5902_s3 + $0x34] ss:$8 sps:$4 sm:$0xff]  }
 0x120   : > { %2626 = vmatprep.subr.bf16.mxu1 %v4022_v20  ;;  %v863_v20 = vld [vmem:[#allocation2 + $0x378] sm:$0xff] }
 0x121   : > { %2627 = vmatpush1.bf16.msra.mxu1 %v4020_v24  ;;  %v856_v24 = vld [vmem:[#allocation2 + $0x340] sm:$0xff] }
 0x122   : > { %2628 = vmatprep.subr.bf16.mxu1 %v4025_v32 }
 0x123   : > { %1701 = vmatmul.mubr.bf16.gmra.mrb[48].mxu1 %v611_v12  ;;  %v4037_v12 = vld [vmem:[%s5902_s3 + $0x84] ss:$8 sps:$4 sm:$0xff]  }
 0x124   : > { %1710 = vmatprep.mubr.bf16.mxu1 %v619_v13  ;;  %v4046_v13 = vld [vmem:[%s5902_s3 + $0xb4] ss:$8 sps:$4 sm:$0xff]  }
 0x125   : > { %2629 = vmatpush1.bf16.msra.mxu1 %v4023_v62 }
 0x126   : > { %2077 = vmatmul.mubr.bf16.gmra.mrb[44].mxu0 %v6022_v10  ;;  %v4026_v10 = vld [vmem:[%s5902_s3 + $0x50] ss:$8 sps:$4 sm:$0xff]   ;;  %2630 = vmatprep.subr.bf16.mxu1 %v4028_v50 }
 0x127   : > { %2086 = vmatprep.mubr.bf16.mxu0 %v6023_v35  ;;  %v4032_v35 = vld [vmem:[%s5902_s3 + $0x70] ss:$8 sps:$4 sm:$0xff]  }
 0x129   : > { %2631 = vmatpush1.bf16.msra.mxu1 %v4026_v10 }
 0x12a   : > { %2632 = vmatprep.subr.bf16.mxu1 %v4031_v33 }
 0x12b   : > { %1711 = vmatmul.mubr.bf16.gmra.mrb[52].mxu1 %v618_v46  ;;  %v4055_v46 = vld [vmem:[%s5902_s3 + $0xe4] ss:$8 sps:$4 sm:$0xff]  }
 0x12c   : > { %1720 = vmatprep.mubr.bf16.mxu1 %v626_v41 }
 0x12d   : > { %2633 = vmatpush1.bf16.msra.mxu1 %v4029_v54 }
 0x12e   : > { %2087 = vmatmul.mubr.bf16.gmra.mrb[48].mxu0 %v6024_v43  ;;  %2634 = vmatprep.subr.bf16.mxu1 %v4034_v26  ;;  %v4041_v43 = vld [vmem:[%s5902_s3 + $0xa0] ss:$8 sps:$4 sm:$0xff]  }
 0x12f   : > { %2096 = vmatprep.mubr.bf16.mxu0 %v6027_v27  ;;  %v4050_v27 = vld [vmem:[%s5902_s3 + $0xd0] ss:$8 sps:$4 sm:$0xff]  }
 0x131   : > { %2635 = vmatpush1.bf16.msra.mxu1 %v4032_v35 }
 0x132   : > { %2636 = vmatprep.subr.bf16.mxu1 %v4037_v12 }
 0x133   : > { %1721 = vmatmul.mubr.bf16.gmra.mrb[56].mxu1 %v625_v5 }
 0x134   : > { %1730 = vmatprep.mubr.bf16.mxu1 %v633_v28 }
 0x135   : > { %2637 = vmatpush1.bf16.msra.mxu1 %v4035_v63 }
 0x136   : > { %2097 = vmatmul.mubr.bf16.gmra.mrb[52].mxu0 %v6030_v17  ;;  %2638 = vmatprep.subr.bf16.mxu1 %v4040_v34 }
 0x137   : > { %2106 = vmatprep.mubr.bf16.mxu0 %v6033_v1  ;;  %v4058_v1 = vld [vmem:[%s5902_s3 + $0xf4] ss:$8 sps:$4 sm:$0xff]  }
 0x139   : > { %2639 = vmatpush1.bf16.msra.mxu1 %v4038_v16 }
 0x13a   : > { %2640 = vmatprep.subr.bf16.mxu1 %v4043_v22 }
 0x13b   : > { %1731 = vmatmul.mubr.bf16.gmra.mrb[60].mxu1 %v632_v11 }
 0x13d   : > { %2641 = vmatpush1.bf16.msra.mxu1 %v4041_v43 }
 0x13e   : > { %2107 = vmatmul.mubr.bf16.gmra.mrb[56].mxu0 %v6036_v40  ;;  %2642 = vmatprep.subr.bf16.mxu1 %v4046_v13 }
 0x13f   : > { %2116 = vmatprep.mubr.bf16.mxu0 %v6039_v2 }
 0x141   : > { %2643 = vmatpush1.bf16.msra.mxu1 %v4044_v48 }
 0x142   : > { %2644 = vmatprep.subr.bf16.mxu1 %v4049_v19 }
 0x145   : > { %2645 = vmatpush1.bf16.msra.mxu1 %v4047_v31 }
 0x146   : > { %2117 = vmatmul.mubr.bf16.gmra.mrb[60].mxu0 %v6042_v47  ;;  %2646 = vmatprep.subr.bf16.mxu1 %v4052_v36 }
 0x147   : > { %2159 = vmatprep.mubr.bf16.mxu0 %v4083_v51 }
 0x149   : > { %2647 = vmatpush1.bf16.msra.mxu1 %v4050_v27 }
 0x14a   : > { %2648 = vmatprep.subr.bf16.mxu1 %v4055_v46 }
 0x14d   : > { %2649 = vmatpush1.bf16.msra.mxu1 %v4053_v57 }
 0x14e   : > { %2160 = vmatmul.mubr.bf16.vlgmr.msra.gmra.mrb[0].mxu0 %v758_v29  ;;  %2650 = vmatprep.subr.bf16.mxu1 %v4058_v1 }
 0x14f   : > { %2169 = vmatprep.mubr.bf16.mxu0 %v4083_v51 }
 0x151   : > { %2651 = vmatpush1.bf16.msra.mxu1 %v4056_v9  ;;  %v978_v9 = vlaneseq }
 0x156   : > { %2170 = vmatmul.mubr.bf16.gmra.mrb[4].mxu0 %v765_v14 }
 0x157   : > { %2179 = vmatprep.mubr.bf16.mxu0 %v4083_v51 }
 0x15e   : > { %2180 = vmatmul.mubr.bf16.gmra.mrb[8].mxu0 %v772_v53 }
 0x15f   : > { %2189 = vmatprep.mubr.bf16.mxu0 %v4083_v51 }
 0x166   : > { %2190 = vmatmul.mubr.bf16.gmra.mrb[12].mxu0 %v779_v30 }
 0x167   : > { %2199 = vmatprep.mubr.bf16.mxu0 %v4083_v51 }
 0x16e   : > { %2200 = vmatmul.mubr.bf16.gmra.mrb[16].mxu0 %v786_v6 }
 0x16f   : > { %2209 = vmatprep.mubr.bf16.mxu0 %v4083_v51 }
 0x176   : > { %2210 = vmatmul.mubr.bf16.gmra.mrb[20].mxu0 %v793_v42 }
 0x177   : > { %2219 = vmatprep.mubr.bf16.mxu0 %v4083_v51 }
 0x17e   : > { %2220 = vmatmul.mubr.bf16.gmra.mrb[24].mxu0 %v800_v4 }
 0x17f   : > { %2229 = vmatprep.mubr.bf16.mxu0 %v4083_v51 }
 0x186   : > { %2230 = vmatmul.mubr.bf16.gmra.mrb[28].mxu0 %v807_v21 }
 0x187   : > { %2239 = vmatprep.mubr.bf16.mxu0 %v4083_v51 }
 0x18e   : > { %2240 = vmatmul.mubr.bf16.gmra.mrb[32].mxu0 %v814_v52 }
 0x18f   : > { %2249 = vmatprep.mubr.bf16.mxu0 %v4083_v51 }
 0x196   : > { %2250 = vmatmul.mubr.bf16.gmra.mrb[36].mxu0 %v821_v44  ;;  %v5416_v17 = vpop.f32.mrb[0].mxu1 }
 0x197   : > { %2259 = vmatprep.mubr.bf16.mxu0 %v4083_v51  ;;  %v5418_v41 = vpop.f32.mrb[1].mxu1 }
 0x198   : > { %v5420_v61 = vpop.f32.mrb[2].mxu1 }
 0x199   : > { %v5423_v60 = vpop.f32.mrb[3].mxu1 }
 0x19e   : > { %2260 = vmatmul.mubr.bf16.gmra.mrb[40].mxu0 %v828_v49  ;;  %v5425_v8 = vpop.f32.mrb[4].mxu1 }
 0x19f   : > { %2269 = vmatprep.mubr.bf16.mxu0 %v4083_v51  ;;  %v5427_v55 = vpop.f32.mrb[5].mxu1 }
 0x1a0   : > { %v5432_v5 = vpop.f32.mrb[6].mxu1 }
 0x1a1   : > { %v5438_v7 = vpop.f32.mrb[7].mxu1 }
 0x1a6   : > { %2270 = vmatmul.mubr.bf16.gmra.mrb[44].mxu0 %v835_v0  ;;  %v5440_v39 = vpop.f32.mrb[8].mxu1  ;;  %v4059_v0 = vld [vmem:[%s5904_s5 + $0x40] sm:$0xff]  }
 0x1a7   : > { %2279 = vmatprep.mubr.bf16.mxu0 %v4083_v51  ;;  %v5442_v3 = vpop.f32.mrb[9].mxu1  ;;  %3465 = vmatprep.subr.bf16.mxu1 %v4059_v0 }
 0x1a8   : > { %v5444_v58 = vpop.f32.mrb[10].mxu1 }
 0x1a9   : > { %v5447_v23 = vpop.f32.mrb[11].mxu1 }
 0x1ae   : > { %2280 = vmatmul.mubr.bf16.gmra.mrb[48].mxu0 %v842_v38  ;;  %v5449_v40 = vpop.f32.mrb[12].mxu1 }
 0x1af   : > { %2289 = vmatprep.mubr.bf16.mxu0 %v4083_v51  ;;  %v5451_v28 = vpop.f32.mrb[13].mxu1 }
 0x1b0   : > { %v5453_v15 = vpop.f32.mrb[14].mxu1 }
 0x1b1   : > { %v5456_v18 = vpop.f32.mrb[15].mxu1 }
 0x1b6   : > { %2290 = vmatmul.mubr.bf16.gmra.mrb[52].mxu0 %v849_v25  ;;  %v5458_v37 = vpop.f32.mrb[16].mxu1 }
 0x1b7   : > { %2299 = vmatprep.mubr.bf16.mxu0 %v4083_v51  ;;  %v5460_v59 = vpop.f32.mrb[17].mxu1 }
 0x1b8   : > { %v5462_v2 = vpop.f32.mrb[18].mxu1 }
 0x1b9   : > { %v5465_v11 = vpop.f32.mrb[19].mxu1 }
 0x1be   : > { %2300 = vmatmul.mubr.bf16.gmra.mrb[56].mxu0 %v856_v24  ;;  %v5467_v56 = vpop.f32.mrb[20].mxu1  ;;  %v5550_v24 = vshrl.u32 %v978_v9, 7 }
 0x1bf   : > { %2309 = vmatprep.mubr.bf16.mxu0 %v4083_v51  ;;  %v5469_v45 = vpop.f32.mrb[21].mxu1 }
 0x1c0   : > { %v5471_v47 = vpop.f32.mrb[22].mxu1  ;;  %6057 = vst [vmem:[#allocation10_spill] sm:$0xff] %v5550_v24 }
 0x1c1   : > { %v5473_v62 = vpop.f32.mrb[23].mxu1 }
 0x1c6   : > { %2310 = vmatmul.mubr.bf16.gmra.mrb[60].mxu0 %v863_v20  ;;  %v5475_v32 = vpop.f32.mrb[24].mxu1 }
 0x1c7   : > { %v5477_v50 = vpop.f32.mrb[25].mxu1 }
 0x1c8   : > { %v5479_v10 = vpop.f32.mrb[26].mxu1 }
 0x1c9   : > { %v5481_v33 = vpop.f32.mrb[27].mxu1 }
 0x1ce   : > { %v5483_v51 = vpop.f32.mrb[28].mxu1 }
 0x1cf   : > { %v5485_v29 = vpop.f32.mrb[29].mxu1 }
 0x1d0   : > { %v5487_v54 = vpop.f32.mrb[30].mxu1 }
 0x1d1   : > { %v5489_v26 = vpop.f32.mrb[31].mxu1 }
 0x1d6   : > { %v5491_v35 = vpop.f32.mrb[32].mxu1 }
 0x1d7   : > { %v5493_v12 = vpop.f32.mrb[33].mxu1 }
 0x1d8   : > { %v5495_v14 = vpop.f32.mrb[34].mxu1 }
 0x1d9   : > { %v5497_v63 = vpop.f32.mrb[35].mxu1 }
 0x1de   : > { %v5499_v34 = vpop.f32.mrb[36].mxu1 }
 0x1df   : > { %v5501_v16 = vpop.f32.mrb[37].mxu1 }
 0x1e0   : > { %v5503_v22 = vpop.f32.mrb[38].mxu1 }
 0x1e1   : > { %v5505_v53 = vpop.f32.mrb[39].mxu1 }
 0x1e6   : > { %v5507_v43 = vpop.f32.mrb[40].mxu1 }
 0x1e7   : > { %v5509_v13 = vpop.f32.mrb[41].mxu1 }
 0x1e8   : > { %v5511_v48 = vpop.f32.mrb[42].mxu1 }
 0x1e9   : > { %v5513_v19 = vpop.f32.mrb[43].mxu1 }
 0x1ee   : > { %v5515_v30 = vpop.f32.mrb[44].mxu1 }
 0x1ef   : > { %v5517_v31 = vpop.f32.mrb[45].mxu1 }
 0x1f0   : > { %v5519_v36 = vpop.f32.mrb[46].mxu1 }
 0x1f1   : > { %6043 = vst [vmem:[#allocation11_spill] sm:$0xff] %v5519_v36  ;;  %v5521_v27 = vpop.f32.mrb[47].mxu1 }
 0x1f2   : > { %6044 = vst [vmem:[#allocation12_spill] sm:$0xff] %v5521_v27 }
 0x1f6   : > { %v5523_v46 = vpop.f32.mrb[48].mxu1 }
 0x1f7   : > { %6045 = vst [vmem:[#allocation13_spill] sm:$0xff] %v5523_v46  ;;  %v5525_v6 = vpop.f32.mrb[49].mxu1 }
 0x1f8   : > { %6046 = vst [vmem:[#allocation14_spill] sm:$0xff] %v5525_v6  ;;  %v5527_v57 = vpop.f32.mrb[50].mxu1 }
 0x1f9   : > { %6047 = vst [vmem:[#allocation3_spill] sm:$0xff] %v5527_v57  ;;  %v5529_v42 = vpop.f32.mrb[51].mxu1 }
 0x1fa   : > { %6048 = vst [vmem:[#allocation16_spill] sm:$0xff] %v5529_v42 }
 0x1fe   : > { %v5531_v4 = vpop.f32.mrb[52].mxu1 }
 0x1ff   : > { %6049 = vst [vmem:[#allocation15_spill] sm:$0xff] %v5531_v4  ;;  %v5533_v21 = vpop.f32.mrb[53].mxu1 }
 0x200   : > { %6050 = vst [vmem:[#allocation4_spill] sm:$0xff] %v5533_v21  ;;  %v5535_v52 = vpop.f32.mrb[54].mxu1  ;;  %v5933_v21 = vsub.s32 1, %v5550_v24 }
 0x201   : > { %6051 = vst [vmem:[#allocation5_spill] sm:$0xff] %v5535_v52  ;;  %v5537_v44 = vpop.f32.mrb[55].mxu1 }
 0x202   : > { %6052 = vst [vmem:[#allocation17_spill] sm:$0xff] %v5537_v44 }
 0x206   : > { %v5539_v49 = vpop.f32.mrb[56].mxu1 }
 0x207   : > { %6053 = vst [vmem:[#allocation6_spill] sm:$0xff] %v5539_v49  ;;  %v5544_v1 = vpop.f32.mrb[57].mxu1  ;;  %v5930_v49 = vsub.s32 0, %v5550_v24 }
 0x208   : > { %6054 = vst [vmem:[#allocation7_spill] sm:$0xff] %v5544_v1  ;;  %v5546_v38 = vpop.f32.mrb[58].mxu1  ;;  %v976_v1 = vld [vmem:[%s5901_s2] sm:$0x3] }
 0x209   : > { %6055 = vst [vmem:[#allocation8_spill] sm:$0xff] %v5546_v38  ;;  %v5548_v25 = vpop.f32.mrb[59].mxu1  ;;  %v5567_v0 = vrot.slane %v976_v1, %v5930_v49  ;;  %v5571_v9 = vrot.slane %v976_v1, %v5933_v21 }
 0x20a   : > { %6056 = vst [vmem:[#allocation9_spill] sm:$0xff] %v5548_v25 }
 0x20b   : > { %v1587_v25 = vadd.f32 %v5420_v61, %v5567_v0  ;;  %v1589_v49 = vadd.f32 %v5423_v60, %v5571_v9  ;;  %v1595_v61 = vadd.f32 %v5427_v55, %v5571_v9  ;;  %v4060_v60 = vld [vmem:[%s5904_s5] sm:$0xff]  }
 0x20e   : > { %v5552_v20 = vpop.f32.mrb[60].mxu1 }
 0x20f   : > { %6058 = vst [vmem:[#allocation18_spill] sm:$0xff] %v5552_v20  ;;  %v5554_v52 = vpop.f32.mrb[61].mxu1 }
 0x210   : > { %6059 = vst [vmem:[#allocation19_spill] sm:$0xff] %v5554_v52  ;;  %v5557_v44 = vpop.f32.mrb[62].mxu1  ;;  %v1583_v52 = vadd.f32 %v5416_v17, %v5567_v0  ;;  %v1593_v17 = vadd.f32 %v5425_v8, %v5567_v0  ;;  %v4061_v8 = vld [vmem:[%s5904_s5 + $0x48] sm:$0xff]  }
 0x211   : > { %6060 = vst [vmem:[#allocation20_spill] sm:$0xff] %v5557_v44  ;;  %v5563_v38 = vpop.f32.mrb[63].mxu1  ;;  %v1585_v44 = vadd.f32 %v5418_v41, %v5571_v9 }
 0x212   : > { %6061 = vst [vmem:[#allocation21_spill] sm:$0xff] %v5563_v38 }
 0x221   : > { %v2161_v20 = vpop.f32.mrb[0].mxu0 }
 0x222   : > { %v3578_v4 = vadd.f32 %v2161_v20, %v1583_v52  ;;  %v2163_v38 = vpop.f32.mrb[1].mxu0 }
 0x223   : > { %v3580_v42 = vadd.f32 %v2163_v38, %v1585_v44  ;;  %v2165_v57 = vpop.f32.mrb[2].mxu0  ;;  %v1603_v38 = vadd.f32 %v5440_v39, %v5567_v0  ;;  %v1607_v39 = vadd.f32 %v5444_v58, %v5567_v0  ;;  %v4066_v58 = vld [vmem:[%s5904_s5 + $0x18] sm:$0xff]  }
 0x224   : > { %v3582_v24 = vadd.f32 %v2165_v57, %v1587_v25  ;;  %v2167_v1 = vpop.f32.mrb[3].mxu0  ;;  %v2320_v6 = vmax.f32 %v3578_v4, 0.0  ;;  %v1597_v57 = vadd.f32 %v5432_v5, %v5567_v0  ;;  %v4062_v5 = vld [vmem:[%s5904_s5 + $0x8] sm:$0xff]  }
 0x225   : > { %v3584_v21 = vadd.f32 %v2167_v1, %v1589_v49  ;;  %v2321_v41 = vmax.f32 %v3580_v42, 0.0  ;;  %v1599_v42 = vadd.f32 %v5438_v7, %v5571_v9  ;;  %v4063_v7 = vld [vmem:[%s5904_s5 + $0x50] sm:$0xff]   ;;  %v1605_v1 = vadd.f32 %v5442_v3, %v5571_v9 }
 0x226   : > { %v2322_v46 = vmax.f32 %v3582_v24, 0.0  ;;  %v1609_v3 = vadd.f32 %v5447_v23, %v5571_v9  ;;  %v4067_v23 = vld [vmem:[%s5904_s5 + $0x60] sm:$0xff]  }
 0x227   : > { %v2323_v27 = vmax.f32 %v3584_v21, 0.0 }
 0x228   : > { %v2384_v52 = vpack.c.bf16 %v2322_v46, %v2320_v6 }
 0x229   : > { %v2385_v20 = vpack.c.bf16 %v2323_v27, %v2321_v41  ;;  %v2171_v36 = vpop.f32.mrb[4].mxu0 }
 0x22a   : > { %v3586_v4 = vadd.f32 %v2171_v36, %v1593_v17  ;;  %v2173_v44 = vpop.f32.mrb[5].mxu0 }
 0x22b   : > { %v3588_v55 = vadd.f32 %v2173_v44, %v1595_v61  ;;  %v2175_v46 = vpop.f32.mrb[6].mxu0  ;;  %2652 = vmatprep.mubr.bf16.mxu1 %v2385_v20 }
 0x22c   : > { %v3590_v27 = vadd.f32 %v2175_v46, %v1597_v57  ;;  %v2177_v6 = vpop.f32.mrb[7].mxu0  ;;  %2653 = vmatmul.mubr.bf16.vlgmr.msra.gmra.mrb[64].mxu1 %v2384_v52  ;;  %v2324_v36 = vmax.f32 %v3586_v4, 0.0  ;;  %v4064_v52 = vld [vmem:[%s5904_s5 + $0x10] sm:$0xff]   ;;  %v4065_v57 = vld [vmem:[%s5904_s5 + $0x58] sm:$0xff]  }
 0x22d   : > { %v3592_v21 = vadd.f32 %v2177_v6, %v1599_v42  ;;  %3466 = vmatpush3.bf16.msra.mxu1 %v4060_v60  ;;  %v2325_v25 = vmax.f32 %v3588_v55, 0.0  ;;  %v1613_v6 = vadd.f32 %v5449_v40, %v5567_v0  ;;  %v1617_v40 = vadd.f32 %v5453_v15, %v5567_v0  ;;  %v4070_v15 = vld [vmem:[%s5904_s5 + $0x28] sm:$0xff]  }
 0x22e   : > { %v2326_v49 = vmax.f32 %v3590_v27, 0.0  ;;  %3467 = vmatprep.subr.bf16.mxu1 %v4061_v8 }
 0x22f   : > { %v2327_v24 = vmax.f32 %v3592_v21, 0.0 }
 0x230   : > { %v2386_v17 = vpack.c.bf16 %v2326_v49, %v2324_v36  ;;  %v1615_v36 = vadd.f32 %v5451_v28, %v5571_v9  ;;  %v1619_v28 = vadd.f32 %v5456_v18, %v5571_v9  ;;  %v4071_v18 = vld [vmem:[%s5904_s5 + $0x70] sm:$0xff]  }
 0x231   : > { %v2387_v41 = vpack.c.bf16 %v2327_v24, %v2325_v25  ;;  %v2181_v61 = vpop.f32.mrb[8].mxu0  ;;  %3468 = vmatpush3.bf16.msra.mxu1 %v4062_v5  ;;  %v4068_v25 = vld [vmem:[%s5904_s5 + $0x20] sm:$0xff]  }
 0x232   : > { %v3594_v20 = vadd.f32 %v2181_v61, %v1603_v38  ;;  %v2183_v60 = vpop.f32.mrb[9].mxu0  ;;  %3469 = vmatprep.subr.bf16.mxu1 %v4063_v7 }
 0x233   : > { %v3596_v4 = vadd.f32 %v2183_v60, %v1605_v1  ;;  %v2185_v44 = vpop.f32.mrb[10].mxu0  ;;  %2662 = vmatprep.mubr.bf16.mxu1 %v2387_v41 }
 0x234   : > { %v3598_v8 = vadd.f32 %v2185_v44, %v1607_v39  ;;  %v2187_v42 = vpop.f32.mrb[11].mxu0  ;;  %2663 = vmatmul.mubr.bf16.gmra.mrb[68].mxu1 %v2386_v17  ;;  %v2328_v46 = vmax.f32 %v3594_v20, 0.0  ;;  %v4069_v17 = vld [vmem:[%s5904_s5 + $0x68] sm:$0xff]  }
 0x235   : > { %v3600_v55 = vadd.f32 %v2187_v42, %v1609_v3  ;;  %3470 = vmatpush3.bf16.msra.mxu1 %v4064_v52  ;;  %v2329_v21 = vmax.f32 %v3596_v4, 0.0  ;;  %v1623_v3 = vadd.f32 %v5458_v37, %v5567_v0  ;;  %v1627_v37 = vadd.f32 %v5462_v2, %v5567_v0  ;;  %v4074_v2 = vld [vmem:[%s5904_s5 + $0x38] sm:$0xff]  }
 0x236   : > { %v2330_v27 = vmax.f32 %v3598_v8, 0.0  ;;  %3471 = vmatprep.subr.bf16.mxu1 %v4065_v57  ;;  %v1625_v8 = vadd.f32 %v5460_v59, %v5571_v9  ;;  %v1629_v59 = vadd.f32 %v5465_v11, %v5571_v9 }
 0x237   : > { %v2331_v5 = vmax.f32 %v3600_v55, 0.0 }
 0x238   : > { %v2388_v49 = vpack.c.bf16 %v2330_v27, %v2328_v46  ;;  %v4072_v46 = vld [vmem:[%s5904_s5 + $0x30] sm:$0xff]  }
 0x239   : > { %v2389_v38 = vpack.c.bf16 %v2331_v5, %v2329_v21  ;;  %v2191_v7 = vpop.f32.mrb[12].mxu0  ;;  %3472 = vmatpush3.bf16.msra.mxu1 %v4066_v58 }
 0x23a   : > { %v3602_v24 = vadd.f32 %v2191_v7, %v1613_v6  ;;  %v2193_v1 = vpop.f32.mrb[13].mxu0  ;;  %3473 = vmatprep.subr.bf16.mxu1 %v4067_v23  ;;  %v4073_v23 = vld [vmem:[%s5904_s5 + $0x78] sm:$0xff]  }
 0x23b   : > { %v3604_v41 = vadd.f32 %v2193_v1, %v1615_v36  ;;  %v2195_v61 = vpop.f32.mrb[14].mxu0  ;;  %2672 = vmatprep.mubr.bf16.mxu1 %v2389_v38  ;;  %v1635_v1 = vadd.f32 %v5469_v45, %v5571_v9 }
 0x23c   : > { %v3606_v52 = vadd.f32 %v2195_v61, %v1617_v40  ;;  %v2197_v39 = vpop.f32.mrb[15].mxu0  ;;  %2673 = vmatmul.mubr.bf16.gmra.mrb[72].mxu1 %v2388_v49  ;;  %v2332_v60 = vmax.f32 %v3602_v24, 0.0  ;;  %v1633_v40 = vadd.f32 %v5467_v56, %v5567_v0  ;;  %v1637_v61 = vadd.f32 %v5471_v47, %v5567_v0 }
 0x23d   : > { %v3608_v20 = vadd.f32 %v2197_v39, %v1619_v28  ;;  %3474 = vmatpush3.bf16.msra.mxu1 %v4068_v25  ;;  %v2333_v4 = vmax.f32 %v3604_v41, 0.0  ;;  %v1645_v47 = vadd.f32 %v5477_v50, %v5571_v9 }
 0x23e   : > { %v2334_v57 = vmax.f32 %v3606_v52, 0.0  ;;  %3475 = vmatprep.subr.bf16.mxu1 %v4069_v17 }
 0x23f   : > { %v2335_v44 = vmax.f32 %v3608_v20, 0.0  ;;  %v1639_v20 = vadd.f32 %v5473_v62, %v5571_v9 }
 0x240   : > { %v2390_v42 = vpack.c.bf16 %v2334_v57, %v2332_v60 }
 0x241   : > { %v2391_v55 = vpack.c.bf16 %v2335_v44, %v2333_v4  ;;  %v2201_v58 = vpop.f32.mrb[16].mxu0  ;;  %3476 = vmatpush3.bf16.msra.mxu1 %v4070_v15  ;;  %v1643_v4 = vadd.f32 %v5475_v32, %v5567_v0 }
 0x242   : > { %v3610_v27 = vadd.f32 %v2201_v58, %v1623_v3  ;;  %v2203_v6 = vpop.f32.mrb[17].mxu0  ;;  %3477 = vmatprep.subr.bf16.mxu1 %v4071_v18  ;;  %v1647_v58 = vadd.f32 %v5479_v10, %v5567_v0  ;;  %v1655_v10 = vadd.f32 %v5485_v29, %v5571_v9 }
 0x243   : > { %v3612_v21 = vadd.f32 %v2203_v6, %v1625_v8  ;;  %v2205_v5 = vpop.f32.mrb[18].mxu0  ;;  %2682 = vmatprep.mubr.bf16.mxu1 %v2391_v55 }
 0x244   : > { %v3614_v36 = vadd.f32 %v2205_v5, %v1627_v37  ;;  %v2207_v49 = vpop.f32.mrb[19].mxu0  ;;  %2683 = vmatmul.mubr.bf16.gmra.mrb[76].mxu1 %v2390_v42  ;;  %v2336_v7 = vmax.f32 %v3610_v27, 0.0  ;;  %v1649_v27 = vadd.f32 %v5481_v33, %v5571_v9 }
 0x245   : > { %v3616_v38 = vadd.f32 %v2207_v49, %v1629_v59  ;;  %3478 = vmatpush3.bf16.msra.mxu1 %v4072_v46  ;;  %v2337_v24 = vmax.f32 %v3612_v21, 0.0 }
 0x246   : > { %v2338_v25 = vmax.f32 %v3614_v36, 0.0  ;;  %3479 = vmatprep.subr.bf16.mxu1 %v4073_v23  ;;  %v1653_v36 = vadd.f32 %v5483_v51, %v5567_v0 }
 0x247   : > { %v2339_v11 = vmax.f32 %v3616_v38, 0.0 }
 0x248   : > { %v2392_v17 = vpack.c.bf16 %v2338_v25, %v2336_v7  ;;  %v1657_v25 = vadd.f32 %v5487_v54, %v5567_v0  ;;  %v1665_v54 = vadd.f32 %v5493_v12, %v5571_v9 }
 0x249   : > { %v2393_v28 = vpack.c.bf16 %v2339_v11, %v2337_v24  ;;  %v2211_v41 = vpop.f32.mrb[20].mxu0  ;;  %3480 = vmatpush3.bf16.msra.mxu1 %v4074_v2  ;;  %v1659_v11 = vadd.f32 %v5489_v26, %v5571_v9 }
 0x24a   : > { %v3618_v52 = vadd.f32 %v2211_v41, %v1633_v40  ;;  %v2213_v39 = vpop.f32.mrb[21].mxu0 }
 0x24b   : > { %v3620_v15 = vadd.f32 %v2213_v39, %v1635_v1  ;;  %v2215_v56 = vpop.f32.mrb[22].mxu0  ;;  %2692 = vmatprep.mubr.bf16.mxu1 %v2393_v28 }
 0x24c   : > { %v3622_v60 = vadd.f32 %v2215_v56, %v1637_v61  ;;  %v2217_v57 = vpop.f32.mrb[23].mxu0  ;;  %2693 = vmatmul.mubr.bf16.gmra.mrb[80].mxu1 %v2392_v17  ;;  %v2340_v45 = vmax.f32 %v3618_v52, 0.0  ;;  %v1663_v52 = vadd.f32 %v5491_v35, %v5567_v0 }
 0x24d   : > { %v3624_v3 = vadd.f32 %v2217_v57, %v1639_v20  ;;  %v2341_v44 = vmax.f32 %v3620_v15, 0.0 }
 0x24e   : > { %v2342_v18 = vmax.f32 %v3622_v60, 0.0  ;;  %v1667_v60 = vadd.f32 %v5495_v14, %v5567_v0  ;;  %v1675_v14 = vadd.f32 %v5501_v16, %v5571_v9 }
 0x24f   : > { %v2343_v8 = vmax.f32 %v3624_v3, 0.0 }
 0x250   : > { %v2394_v42 = vpack.c.bf16 %v2342_v18, %v2340_v45  ;;  %v1669_v45 = vadd.f32 %v5497_v63, %v5571_v9 }
 0x251   : > { %v2395_v55 = vpack.c.bf16 %v2343_v8, %v2341_v44  ;;  %v2221_v62 = vpop.f32.mrb[24].mxu0 }
 0x252   : > { %v3626_v46 = vadd.f32 %v2221_v62, %v1643_v4  ;;  %v2223_v37 = vpop.f32.mrb[25].mxu0 }
 0x253   : > { %v3628_v6 = vadd.f32 %v2223_v37, %v1645_v47  ;;  %v2225_v23 = vpop.f32.mrb[26].mxu0  ;;  %2702 = vmatprep.mubr.bf16.mxu1 %v2395_v55  ;;  %v1677_v37 = vadd.f32 %v5503_v22, %v5567_v0  ;;  %v1685_v22 = vadd.f32 %v5509_v13, %v5571_v9 }
 0x254   : > { %v3630_v32 = vadd.f32 %v2225_v23, %v1647_v58  ;;  %v2227_v59 = vpop.f32.mrb[27].mxu0  ;;  %2703 = vmatmul.mubr.bf16.gmra.mrb[84].mxu1 %v2394_v42  ;;  %v2344_v5 = vmax.f32 %v3626_v46, 0.0  ;;  %v1673_v42 = vadd.f32 %v5499_v34, %v5567_v0  ;;  %v1679_v23 = vadd.f32 %v5505_v53, %v5571_v9 }
 0x255   : > { %v3632_v21 = vadd.f32 %v2227_v59, %v1649_v27  ;;  %v2345_v49 = vmax.f32 %v3628_v6, 0.0 }
 0x256   : > { %v2346_v50 = vmax.f32 %v3630_v32, 0.0 }
 0x257   : > { %v2347_v38 = vmax.f32 %v3632_v21, 0.0 }
 0x258   : > { %v2396_v2 = vpack.c.bf16 %v2346_v50, %v2344_v5 }
 0x259   : > { %v2397_v7 = vpack.c.bf16 %v2347_v38, %v2345_v49  ;;  %v2231_v33 = vpop.f32.mrb[28].mxu0 }
 0x25a   : > { %v3634_v40 = vadd.f32 %v2231_v33, %v1653_v36  ;;  %v2233_v24 = vpop.f32.mrb[29].mxu0  ;;  %v1683_v36 = vadd.f32 %v5507_v43, %v5567_v0 }
 0x25b   : > { %v3636_v1 = vadd.f32 %v2233_v24, %v1655_v10  ;;  %v2235_v17 = vpop.f32.mrb[30].mxu0  ;;  %2712 = vmatprep.mubr.bf16.mxu1 %v2397_v7  ;;  %v1687_v7 = vadd.f32 %v5511_v48, %v5567_v0  ;;  %v1695_v48 = vadd.f32 %v5517_v31, %v5571_v9 }
 0x25c   : > { %v3638_v51 = vadd.f32 %v2235_v17, %v1657_v25  ;;  %v2237_v28 = vpop.f32.mrb[31].mxu0  ;;  %2713 = vmatmul.mubr.bf16.gmra.mrb[88].mxu1 %v2396_v2  ;;  %v2348_v61 = vmax.f32 %v3634_v40, 0.0  ;;  %v1689_v40 = vadd.f32 %v5513_v19, %v5571_v9 }
 0x25d   : > { %v3640_v41 = vadd.f32 %v2237_v28, %v1659_v11  ;;  %v2349_v39 = vmax.f32 %v3636_v1, 0.0  ;;  %v1693_v28 = vadd.f32 %v5515_v30, %v5567_v0 }
 0x25e   : > { %v2350_v29 = vmax.f32 %v3638_v51, 0.0 }
 0x25f   : > { %v2351_v20 = vmax.f32 %v3640_v41, 0.0 }
 0x260   : > { %v2398_v15 = vpack.c.bf16 %v2350_v29, %v2348_v61 }
 0x261   : > { %v2399_v56 = vpack.c.bf16 %v2351_v20, %v2349_v39  ;;  %v2241_v26 = vpop.f32.mrb[32].mxu0  ;;  %v6062_v39 = vld [vmem:[#allocation11_spill] sm:$0xff] }
 0x262   : > { %v3642_v57 = vadd.f32 %v2241_v26, %v1663_v52  ;;  %v2243_v3 = vpop.f32.mrb[33].mxu0  ;;  %v1697_v20 = vadd.f32 %v6062_v39, %v5567_v0 }
 0x263   : > { %v3644_v18 = vadd.f32 %v2243_v3, %v1665_v54  ;;  %v2245_v4 = vpop.f32.mrb[34].mxu0  ;;  %2722 = vmatprep.mubr.bf16.mxu1 %v2399_v56  ;;  %v6063_v56 = vld [vmem:[#allocation12_spill] sm:$0xff] }
 0x264   : > { %v3646_v35 = vadd.f32 %v2245_v4, %v1667_v60  ;;  %v2247_v44 = vpop.f32.mrb[35].mxu0  ;;  %2723 = vmatmul.mubr.bf16.gmra.mrb[92].mxu1 %v2398_v15  ;;  %v2352_v47 = vmax.f32 %v3642_v57, 0.0  ;;  %v1699_v26 = vadd.f32 %v6063_v56, %v5571_v9  ;;  %v6064_v4 = vld [vmem:[#allocation13_spill] sm:$0xff]  ;;  %v6074_v56 = vld [vmem:[#allocation8_spill] sm:$0xff] }
 0x265   : > { %v3648_v8 = vadd.f32 %v2247_v44, %v1669_v45  ;;  %v2353_v55 = vmax.f32 %v3644_v18, 0.0 }
 0x266   : > { %v2354_v12 = vmax.f32 %v3646_v35, 0.0  ;;  %v1703_v35 = vadd.f32 %v6064_v4, %v5567_v0 }
 0x267   : > { %v2355_v62 = vmax.f32 %v3648_v8, 0.0 }
 0x268   : > { %v2400_v58 = vpack.c.bf16 %v2354_v12, %v2352_v47  ;;  %v6065_v47 = vld [vmem:[#allocation14_spill] sm:$0xff] }
 0x269   : > { %v2401_v46 = vpack.c.bf16 %v2355_v62, %v2353_v55  ;;  %v2251_v63 = vpop.f32.mrb[36].mxu0  ;;  %v1705_v12 = vadd.f32 %v6065_v47, %v5571_v9  ;;  %v6076_v47 = vld [vmem:[#allocation18_spill] sm:$0xff] }
 0x26a   : > { %v3650_v27 = vadd.f32 %v2251_v63, %v1673_v42  ;;  %v2253_v6 = vpop.f32.mrb[37].mxu0 }
 0x26b   : > { %v3652_v32 = vadd.f32 %v2253_v6, %v1675_v14  ;;  %v2255_v59 = vpop.f32.mrb[38].mxu0  ;;  %2732 = vmatprep.mubr.bf16.mxu1 %v2401_v46  ;;  %v6066_v14 = vld [vmem:[#allocation3_spill] sm:$0xff] }
 0x26c   : > { %v3654_v34 = vadd.f32 %v2255_v59, %v1677_v37  ;;  %v2257_v21 = vpop.f32.mrb[39].mxu0  ;;  %2733 = vmatmul.mubr.bf16.gmra.mrb[96].mxu1 %v2400_v58  ;;  %v2356_v50 = vmax.f32 %v3650_v27, 0.0  ;;  %v1707_v58 = vadd.f32 %v6066_v14, %v5567_v0  ;;  %v6067_v37 = vld [vmem:[#allocation16_spill] sm:$0xff] }
 0x26d   : > { %v3656_v5 = vadd.f32 %v2257_v21, %v1679_v23  ;;  %v2357_v49 = vmax.f32 %v3652_v32, 0.0  ;;  %v1709_v27 = vadd.f32 %v6067_v37, %v5571_v9  ;;  %v6078_v37 = vld [vmem:[#allocation20_spill] sm:$0xff] }
 0x26e   : > { %v2358_v16 = vmax.f32 %v3654_v34, 0.0 }
 0x26f   : > { %v2359_v38 = vmax.f32 %v3656_v5, 0.0 }
 0x270   : > { %v2402_v10 = vpack.c.bf16 %v2358_v16, %v2356_v50  ;;  %v6068_v50 = vld [vmem:[#allocation15_spill] sm:$0xff] }
 0x271   : > { %v2403_v2 = vpack.c.bf16 %v2359_v38, %v2357_v49  ;;  %v2261_v53 = vpop.f32.mrb[40].mxu0  ;;  %v1713_v16 = vadd.f32 %v6068_v50, %v5567_v0  ;;  %v6069_v38 = vld [vmem:[#allocation4_spill] sm:$0xff] }
 0x272   : > { %v3658_v33 = vadd.f32 %v2261_v53, %v1683_v36  ;;  %v2263_v25 = vpop.f32.mrb[41].mxu0 }
 0x273   : > { %v3660_v24 = vadd.f32 %v2263_v25, %v1685_v22  ;;  %v2265_v11 = vpop.f32.mrb[42].mxu0  ;;  %2742 = vmatprep.mubr.bf16.mxu1 %v2403_v2  ;;  %v1715_v22 = vadd.f32 %v6069_v38, %v5571_v9 }
 0x274   : > { %v3662_v43 = vadd.f32 %v2265_v11, %v1687_v7  ;;  %v2267_v1 = vpop.f32.mrb[43].mxu0  ;;  %2743 = vmatmul.mubr.bf16.gmra.mrb[100].mxu1 %v2402_v10  ;;  %v2360_v51 = vmax.f32 %v3658_v33, 0.0  ;;  %v6070_v7 = vld [vmem:[#allocation5_spill] sm:$0xff] }
 0x275   : > { %v3664_v17 = vadd.f32 %v2267_v1, %v1689_v40  ;;  %v2361_v41 = vmax.f32 %v3660_v24, 0.0  ;;  %v1717_v33 = vadd.f32 %v6070_v7, %v5567_v0  ;;  %v6071_v24 = vld [vmem:[#allocation17_spill] sm:$0xff] }
 0x276   : > { %v2362_v13 = vmax.f32 %v3662_v43, 0.0  ;;  %v1719_v11 = vadd.f32 %v6071_v24, %v5571_v9 }
 0x277   : > { %v2363_v61 = vmax.f32 %v3664_v17, 0.0 }
 0x278   : > { %v2404_v29 = vpack.c.bf16 %v2362_v13, %v2360_v51 }
 0x279   : > { %v2405_v52 = vpack.c.bf16 %v2363_v61, %v2361_v41  ;;  %v2271_v19 = vpop.f32.mrb[44].mxu0  ;;  %v6072_v61 = vld [vmem:[#allocation6_spill] sm:$0xff] }
 0x27a   : > { %v3666_v54 = vadd.f32 %v2271_v19, %v1693_v28  ;;  %v2273_v15 = vpop.f32.mrb[45].mxu0  ;;  %v6073_v19 = vld [vmem:[#allocation7_spill] sm:$0xff] }
 0x27b   : > { %v3668_v60 = vadd.f32 %v2273_v15, %v1695_v48  ;;  %v2275_v57 = vpop.f32.mrb[46].mxu0  ;;  %2752 = vmatprep.mubr.bf16.mxu1 %v2405_v52  ;;  %v1723_v48 = vadd.f32 %v6072_v61, %v5567_v0  ;;  %v1725_v39 = vadd.f32 %v6073_v19, %v5571_v9 }
 0x27c   : > { %v3670_v30 = vadd.f32 %v2275_v57, %v1697_v20  ;;  %v2277_v3 = vpop.f32.mrb[47].mxu0  ;;  %2753 = vmatmul.mubr.bf16.gmra.mrb[104].mxu1 %v2404_v29  ;;  %v2364_v18 = vmax.f32 %v3666_v54, 0.0 }
 0x27d   : > { %v3672_v45 = vadd.f32 %v2277_v3, %v1699_v26  ;;  %v2365_v44 = vmax.f32 %v3668_v60, 0.0  ;;  %v1727_v26 = vadd.f32 %v6074_v56, %v5567_v0 }
 0x27e   : > { %v2366_v31 = vmax.f32 %v3670_v30, 0.0  ;;  %v6075_v30 = vld [vmem:[#allocation9_spill] sm:$0xff] }
 0x27f   : > { %v2367_v8 = vmax.f32 %v3672_v45, 0.0  ;;  %v1729_v3 = vadd.f32 %v6075_v30, %v5571_v9 }
 0x280   : > { %v2406_v42 = vpack.c.bf16 %v2366_v31, %v2364_v18 }
 0x281   : > { %v2407_v55 = vpack.c.bf16 %v2367_v8, %v2365_v44  ;;  %v2281_v62 = vpop.f32.mrb[48].mxu0 }
 0x282   : > { %v3674_v46 = vadd.f32 %v2281_v62, %v1703_v35  ;;  %v2283_v63 = vpop.f32.mrb[49].mxu0  ;;  %v6077_v62 = vld [vmem:[#allocation19_spill] sm:$0xff] }
 0x283   : > { %v3676_v6 = vadd.f32 %v2283_v63, %v1705_v12  ;;  %v2285_v23 = vpop.f32.mrb[50].mxu0  ;;  %2762 = vmatprep.mubr.bf16.mxu1 %v2407_v55  ;;  %v1733_v12 = vadd.f32 %v6076_v47, %v5567_v0  ;;  %v1735_v14 = vadd.f32 %v6077_v62, %v5571_v9 }
 0x284   : > { %v3678_v32 = vadd.f32 %v2285_v23, %v1707_v58  ;;  %v2287_v59 = vpop.f32.mrb[51].mxu0  ;;  %2763 = vmatmul.mubr.bf16.gmra.mrb[108].mxu1 %v2406_v42  ;;  %v2368_v21 = vmax.f32 %v3674_v46, 0.0 }
 0x285   : > { %v3680_v34 = vadd.f32 %v2287_v59, %v1709_v27  ;;  %v2369_v36 = vmax.f32 %v3676_v6, 0.0  ;;  %v1737_v27 = vadd.f32 %v6078_v37, %v5567_v0  ;;  %v2448_v0 = vld [vmem:[%s5903_s4] sm:$0x3] }
 0x286   : > { %v2370_v5 = vmax.f32 %v3678_v32, 0.0  ;;  %v6079_v32 = vld [vmem:[#allocation21_spill] sm:$0xff] }
 0x287   : > { %v2371_v49 = vmax.f32 %v3680_v34, 0.0  ;;  %v1739_v59 = vadd.f32 %v6079_v32, %v5571_v9  ;;  %v6080_v9 = vld [vmem:[#allocation10_spill] sm:$0xff] }
 0x288   : > { %v2408_v10 = vpack.c.bf16 %v2370_v5, %v2368_v21 }
 0x289   : > { %v2409_v2 = vpack.c.bf16 %v2371_v49, %v2369_v36  ;;  %v2291_v53 = vpop.f32.mrb[52].mxu0 }
 0x28a   : > { %v3682_v25 = vadd.f32 %v2291_v53, %v1713_v16  ;;  %v2293_v40 = vpop.f32.mrb[53].mxu0  ;;  %v6081_v53 = vsub.s32 0, %v6080_v9 }
 0x28b   : > { %v3684_v43 = vadd.f32 %v2293_v40, %v1715_v22  ;;  %v2295_v1 = vpop.f32.mrb[54].mxu0  ;;  %2772 = vmatprep.mubr.bf16.mxu1 %v2409_v2 }
 0x28c   : > { %v3686_v17 = vadd.f32 %v2295_v1, %v1717_v33  ;;  %v2297_v51 = vpop.f32.mrb[55].mxu0  ;;  %2773 = vmatmul.mubr.bf16.gmra.mrb[112].mxu1 %v2408_v10  ;;  %v2372_v28 = vmax.f32 %v3682_v25, 0.0  ;;  %v5751_v7 = vrot.slane %v2448_v0, %v6081_v53  ;;  %v6082_v33 = vsub.s32 1, %v6080_v9 }
 0x28d   : > { %v3688_v13 = vadd.f32 %v2297_v51, %v1719_v11  ;;  %v2373_v29 = vmax.f32 %v3684_v43, 0.0 }
 0x28e   : > { %v2374_v41 = vmax.f32 %v3686_v17, 0.0  ;;  %v5755_v25 = vrot.slane %v2448_v0, %v6082_v33 }
 0x28f   : > { %v2375_v52 = vmax.f32 %v3688_v13, 0.0 }
 0x290   : > { %v2410_v20 = vpack.c.bf16 %v2374_v41, %v2372_v28 }
 0x291   : > { %v2411_v54 = vpack.c.bf16 %v2375_v52, %v2373_v29  ;;  %v2301_v15 = vpop.f32.mrb[56].mxu0 }
 0x292   : > { %v3690_v60 = vadd.f32 %v2301_v15, %v1723_v48  ;;  %v2303_v57 = vpop.f32.mrb[57].mxu0 }
 0x293   : > { %v3692_v45 = vadd.f32 %v2303_v57, %v1725_v39  ;;  %v2305_v18 = vpop.f32.mrb[58].mxu0  ;;  %2782 = vmatprep.mubr.bf16.mxu1 %v2411_v54 }
 0x294   : > { %v3694_v31 = vadd.f32 %v2305_v18, %v1727_v26  ;;  %v2307_v4 = vpop.f32.mrb[59].mxu0  ;;  %2783 = vmatmul.mubr.bf16.gmra.mrb[116].mxu1 %v2410_v20  ;;  %v2376_v44 = vmax.f32 %v3690_v60, 0.0 }
 0x295   : > { %v3696_v35 = vadd.f32 %v2307_v4, %v1729_v3  ;;  %v2377_v42 = vmax.f32 %v3692_v45, 0.0 }
 0x296   : > { %v2378_v8 = vmax.f32 %v3694_v31, 0.0 }
 0x297   : > { %v2379_v55 = vmax.f32 %v3696_v35, 0.0 }
 0x298   : > { %v2412_v58 = vpack.c.bf16 %v2378_v8, %v2376_v44 }
 0x299   : > { %v2413_v46 = vpack.c.bf16 %v2379_v55, %v2377_v42  ;;  %v2311_v63 = vpop.f32.mrb[60].mxu0 }
 0x29a   : > { %v3698_v6 = vadd.f32 %v2311_v63, %v1733_v12  ;;  %v2313_v23 = vpop.f32.mrb[61].mxu0 }
 0x29b   : > { %v3700_v34 = vadd.f32 %v2313_v23, %v1735_v14  ;;  %v2315_v21 = vpop.f32.mrb[62].mxu0  ;;  %2792 = vmatprep.mubr.bf16.mxu1 %v2413_v46 }
 0x29c   : > { %v3702_v5 = vadd.f32 %v2315_v21, %v1737_v27  ;;  %v2317_v50 = vpop.f32.mrb[63].mxu0  ;;  %2793 = vmatmul.mubr.bf16.gmra.mrb[120].mxu1 %v2412_v58  ;;  %v2380_v36 = vmax.f32 %v3698_v6, 0.0 }
 0x29d   : > { %v3704_v16 = vadd.f32 %v2317_v50, %v1739_v59  ;;  %v2381_v38 = vmax.f32 %v3700_v34, 0.0 }
 0x29e   : > { %v2382_v49 = vmax.f32 %v3702_v5, 0.0 }
 0x29f   : > { %v2383_v22 = vmax.f32 %v3704_v16, 0.0 }
 0x2a0   : > { %v2414_v10 = vpack.c.bf16 %v2382_v49, %v2380_v36 }
 0x2a1   : > { %v2415_v2 = vpack.c.bf16 %v2383_v22, %v2381_v38 }
 0x2a3   : > { %2802 = vmatprep.mubr.bf16.mxu1 %v2415_v2 }
 0x2a4   : > { %2803 = vmatmul.mubr.bf16.gmra.mrb[124].mxu1 %v2414_v10 }
 0x2ff   : > { %v2654_v40 = vpop.f32.mrb[64].mxu1 }
 0x300   : > { %v2655_v24 = vadd.f32 %v2654_v40, %v5751_v7  ;;  %v2656_v11 = vpop.f32.mrb[65].mxu1 }
 0x301   : > { %v2657_v43 = vadd.f32 %v2656_v11, %v5755_v25  ;;  %v2658_v1 = vpop.f32.mrb[66].mxu1 }
 0x302   : > { %v2659_v17 = vadd.f32 %v2658_v1, %v5751_v7  ;;  %v2660_v51 = vpop.f32.mrb[67].mxu1  ;;  %v2813_v28 = vmax.f32 %v2655_v24, 0.0 }
 0x303   : > { %v2661_v13 = vadd.f32 %v2660_v51, %v5755_v25  ;;  %v2814_v61 = vmax.f32 %v2657_v43, 0.0 }
 0x304   : > { %v2815_v41 = vmax.f32 %v2659_v17, 0.0 }
 0x305   : > { %v2816_v48 = vmax.f32 %v2661_v13, 0.0 }
 0x306   : > { %v2877_v29 = vpack.c.bf16 %v2815_v41, %v2813_v28 }
 0x307   : > { %v2878_v52 = vpack.c.bf16 %v2816_v48, %v2814_v61  ;;  %v2664_v19 = vpop.f32.mrb[68].mxu1 }
 0x308   : > { %v2665_v39 = vadd.f32 %v2664_v19, %v5751_v7  ;;  %v2666_v20 = vpop.f32.mrb[69].mxu1 }
 0x309   : > { %v2667_v54 = vadd.f32 %v2666_v20, %v5755_v25  ;;  %v2668_v15 = vpop.f32.mrb[70].mxu1  ;;  %3076 = vmatprep.mubr.bf16.mxu1 %v2878_v52 }
 0x30a   : > { %v2669_v56 = vadd.f32 %v2668_v15, %v5751_v7  ;;  %v2670_v26 = vpop.f32.mrb[71].mxu1  ;;  %3077 = vmatmul.mubr.bf16.vlgmr.msra.gmra.mrb[128].mxu1 %v2877_v29  ;;  %v2817_v57 = vmax.f32 %v2665_v39, 0.0 }
 0x30b   : > { %v2671_v60 = vadd.f32 %v2670_v26, %v5755_v25  ;;  %v2818_v3 = vmax.f32 %v2667_v54, 0.0 }
 0x30c   : > { %v2819_v30 = vmax.f32 %v2669_v56, 0.0 }
 0x30d   : > { %v2820_v45 = vmax.f32 %v2671_v60, 0.0 }
 0x30e   : > { %v2879_v18 = vpack.c.bf16 %v2819_v30, %v2817_v57 }
 0x30f   : > { %v2880_v31 = vpack.c.bf16 %v2820_v45, %v2818_v3  ;;  %v2674_v4 = vpop.f32.mrb[72].mxu1 }
 0x310   : > { %v2675_v35 = vadd.f32 %v2674_v4, %v5751_v7  ;;  %v2676_v44 = vpop.f32.mrb[73].mxu1 }
 0x311   : > { %v2677_v8 = vadd.f32 %v2676_v44, %v5755_v25  ;;  %v2678_v47 = vpop.f32.mrb[74].mxu1  ;;  %3084 = vmatprep.mubr.bf16.mxu1 %v2880_v31 }
 0x312   : > { %v2679_v12 = vadd.f32 %v2678_v47, %v5751_v7  ;;  %v2680_v42 = vpop.f32.mrb[75].mxu1  ;;  %3085 = vmatmul.mubr.bf16.gmra.mrb[132].mxu1 %v2879_v18  ;;  %v2821_v62 = vmax.f32 %v2675_v35, 0.0 }
 0x313   : > { %v2681_v55 = vadd.f32 %v2680_v42, %v5755_v25  ;;  %v2822_v58 = vmax.f32 %v2677_v8, 0.0 }
 0x314   : > { %v2823_v14 = vmax.f32 %v2679_v12, 0.0 }
 0x315   : > { %v2824_v46 = vmax.f32 %v2681_v55, 0.0 }
 0x316   : > { %v2881_v63 = vpack.c.bf16 %v2823_v14, %v2821_v62 }
 0x317   : > { %v2882_v37 = vpack.c.bf16 %v2824_v46, %v2822_v58  ;;  %v2684_v27 = vpop.f32.mrb[76].mxu1 }
 0x318   : > { %v2685_v6 = vadd.f32 %v2684_v27, %v5751_v7  ;;  %v2686_v23 = vpop.f32.mrb[77].mxu1 }
 0x319   : > { %v2687_v32 = vadd.f32 %v2686_v23, %v5755_v25  ;;  %v2688_v59 = vpop.f32.mrb[78].mxu1  ;;  %3092 = vmatprep.mubr.bf16.mxu1 %v2882_v37 }
 0x31a   : > { %v2689_v34 = vadd.f32 %v2688_v59, %v5751_v7  ;;  %v2690_v21 = vpop.f32.mrb[79].mxu1  ;;  %3093 = vmatmul.mubr.bf16.gmra.mrb[136].mxu1 %v2881_v63  ;;  %v2825_v50 = vmax.f32 %v2685_v6, 0.0 }
 0x31b   : > { %v2691_v5 = vadd.f32 %v2690_v21, %v5755_v25  ;;  %v2826_v36 = vmax.f32 %v2687_v32, 0.0 }
 0x31c   : > { %v2827_v16 = vmax.f32 %v2689_v34, 0.0 }
 0x31d   : > { %v2828_v49 = vmax.f32 %v2691_v5, 0.0 }
 0x31e   : > { %v2883_v38 = vpack.c.bf16 %v2827_v16, %v2825_v50 }
 0x31f   : > { %v2884_v22 = vpack.c.bf16 %v2828_v49, %v2826_v36  ;;  %v2694_v10 = vpop.f32.mrb[80].mxu1 }
 0x320   : > { %v2695_v2 = vadd.f32 %v2694_v10, %v5751_v7  ;;  %v2696_v0 = vpop.f32.mrb[81].mxu1 }
 0x321   : > { %v2697_v9 = vadd.f32 %v2696_v0, %v5755_v25  ;;  %v2698_v53 = vpop.f32.mrb[82].mxu1  ;;  %3100 = vmatprep.mubr.bf16.mxu1 %v2884_v22 }
 0x322   : > { %v2699_v33 = vadd.f32 %v2698_v53, %v5751_v7  ;;  %v2700_v40 = vpop.f32.mrb[83].mxu1  ;;  %3101 = vmatmul.mubr.bf16.gmra.mrb[140].mxu1 %v2883_v38  ;;  %v2829_v11 = vmax.f32 %v2695_v2, 0.0 }
 0x323   : > { %v2701_v24 = vadd.f32 %v2700_v40, %v5755_v25  ;;  %v2830_v1 = vmax.f32 %v2697_v9, 0.0 }
 0x324   : > { %v2831_v43 = vmax.f32 %v2699_v33, 0.0 }
 0x325   : > { %v2832_v17 = vmax.f32 %v2701_v24, 0.0 }
 0x326   : > { %v2885_v51 = vpack.c.bf16 %v2831_v43, %v2829_v11 }
 0x327   : > { %v2886_v13 = vpack.c.bf16 %v2832_v17, %v2830_v1  ;;  %v2704_v28 = vpop.f32.mrb[84].mxu1 }
 0x328   : > { %v2705_v41 = vadd.f32 %v2704_v28, %v5751_v7  ;;  %v2706_v61 = vpop.f32.mrb[85].mxu1 }
 0x329   : > { %v2707_v48 = vadd.f32 %v2706_v61, %v5755_v25  ;;  %v2708_v29 = vpop.f32.mrb[86].mxu1  ;;  %3108 = vmatprep.mubr.bf16.mxu1 %v2886_v13 }
 0x32a   : > { %v2709_v52 = vadd.f32 %v2708_v29, %v5751_v7  ;;  %v2710_v19 = vpop.f32.mrb[87].mxu1  ;;  %3109 = vmatmul.mubr.bf16.gmra.mrb[144].mxu1 %v2885_v51  ;;  %v2833_v20 = vmax.f32 %v2705_v41, 0.0 }
 0x32b   : > { %v2711_v39 = vadd.f32 %v2710_v19, %v5755_v25  ;;  %v2834_v15 = vmax.f32 %v2707_v48, 0.0 }
 0x32c   : > { %v2835_v54 = vmax.f32 %v2709_v52, 0.0 }
 0x32d   : > { %v2836_v56 = vmax.f32 %v2711_v39, 0.0 }
 0x32e   : > { %v2887_v26 = vpack.c.bf16 %v2835_v54, %v2833_v20 }
 0x32f   : > { %v2888_v60 = vpack.c.bf16 %v2836_v56, %v2834_v15  ;;  %v2714_v57 = vpop.f32.mrb[88].mxu1 }
 0x330   : > { %v2715_v30 = vadd.f32 %v2714_v57, %v5751_v7  ;;  %v2716_v3 = vpop.f32.mrb[89].mxu1 }
 0x331   : > { %v2717_v45 = vadd.f32 %v2716_v3, %v5755_v25  ;;  %v2718_v18 = vpop.f32.mrb[90].mxu1  ;;  %3116 = vmatprep.mubr.bf16.mxu1 %v2888_v60 }
 0x332   : > { %v2719_v31 = vadd.f32 %v2718_v18, %v5751_v7  ;;  %v2720_v4 = vpop.f32.mrb[91].mxu1  ;;  %3117 = vmatmul.mubr.bf16.gmra.mrb[148].mxu1 %v2887_v26  ;;  %v2837_v44 = vmax.f32 %v2715_v30, 0.0 }
 0x333   : > { %v2721_v35 = vadd.f32 %v2720_v4, %v5755_v25  ;;  %v2838_v47 = vmax.f32 %v2717_v45, 0.0 }
 0x334   : > { %v2839_v8 = vmax.f32 %v2719_v31, 0.0 }
 0x335   : > { %v2840_v12 = vmax.f32 %v2721_v35, 0.0 }
 0x336   : > { %v2889_v42 = vpack.c.bf16 %v2839_v8, %v2837_v44 }
 0x337   : > { %v2890_v55 = vpack.c.bf16 %v2840_v12, %v2838_v47  ;;  %v2724_v62 = vpop.f32.mrb[92].mxu1 }
 0x338   : > { %v2725_v14 = vadd.f32 %v2724_v62, %v5751_v7  ;;  %v2726_v58 = vpop.f32.mrb[93].mxu1 }
 0x339   : > { %v2727_v46 = vadd.f32 %v2726_v58, %v5755_v25  ;;  %v2728_v63 = vpop.f32.mrb[94].mxu1  ;;  %3124 = vmatprep.mubr.bf16.mxu1 %v2890_v55 }
 0x33a   : > { %v2729_v37 = vadd.f32 %v2728_v63, %v5751_v7  ;;  %v2730_v27 = vpop.f32.mrb[95].mxu1  ;;  %3125 = vmatmul.mubr.bf16.gmra.mrb[152].mxu1 %v2889_v42  ;;  %v2841_v23 = vmax.f32 %v2725_v14, 0.0 }
 0x33b   : > { %v2731_v6 = vadd.f32 %v2730_v27, %v5755_v25  ;;  %v2842_v59 = vmax.f32 %v2727_v46, 0.0 }
 0x33c   : > { %v2843_v32 = vmax.f32 %v2729_v37, 0.0 }
 0x33d   : > { %v2844_v34 = vmax.f32 %v2731_v6, 0.0 }
 0x33e   : > { %v2891_v21 = vpack.c.bf16 %v2843_v32, %v2841_v23 }
 0x33f   : > { %v2892_v5 = vpack.c.bf16 %v2844_v34, %v2842_v59  ;;  %v2734_v50 = vpop.f32.mrb[96].mxu1 }
 0x340   : > { %v2735_v16 = vadd.f32 %v2734_v50, %v5751_v7  ;;  %v2736_v36 = vpop.f32.mrb[97].mxu1 }
 0x341   : > { %v2737_v49 = vadd.f32 %v2736_v36, %v5755_v25  ;;  %v2738_v38 = vpop.f32.mrb[98].mxu1  ;;  %3132 = vmatprep.mubr.bf16.mxu1 %v2892_v5 }
 0x342   : > { %v2739_v22 = vadd.f32 %v2738_v38, %v5751_v7  ;;  %v2740_v10 = vpop.f32.mrb[99].mxu1  ;;  %3133 = vmatmul.mubr.bf16.gmra.mrb[156].mxu1 %v2891_v21  ;;  %v2845_v0 = vmax.f32 %v2735_v16, 0.0 }
 0x343   : > { %v2741_v2 = vadd.f32 %v2740_v10, %v5755_v25  ;;  %v2846_v53 = vmax.f32 %v2737_v49, 0.0 }
 0x344   : > { %v2847_v9 = vmax.f32 %v2739_v22, 0.0 }
 0x345   : > { %v2848_v33 = vmax.f32 %v2741_v2, 0.0 }
 0x346   : > { %v2893_v40 = vpack.c.bf16 %v2847_v9, %v2845_v0 }
 0x347   : > { %v2894_v24 = vpack.c.bf16 %v2848_v33, %v2846_v53  ;;  %v2744_v11 = vpop.f32.mrb[100].mxu1 }
 0x348   : > { %v2745_v43 = vadd.f32 %v2744_v11, %v5751_v7  ;;  %v2746_v1 = vpop.f32.mrb[101].mxu1 }
 0x349   : > { %v2747_v17 = vadd.f32 %v2746_v1, %v5755_v25  ;;  %v2748_v51 = vpop.f32.mrb[102].mxu1  ;;  %3140 = vmatprep.mubr.bf16.mxu1 %v2894_v24 }
 0x34a   : > { %v2749_v13 = vadd.f32 %v2748_v51, %v5751_v7  ;;  %v2750_v28 = vpop.f32.mrb[103].mxu1  ;;  %3141 = vmatmul.mubr.bf16.gmra.mrb[160].mxu1 %v2893_v40  ;;  %v2849_v61 = vmax.f32 %v2745_v43, 0.0 }
 0x34b   : > { %v2751_v41 = vadd.f32 %v2750_v28, %v5755_v25  ;;  %v2850_v29 = vmax.f32 %v2747_v17, 0.0 }
 0x34c   : > { %v2851_v48 = vmax.f32 %v2749_v13, 0.0 }
 0x34d   : > { %v2852_v52 = vmax.f32 %v2751_v41, 0.0 }
 0x34e   : > { %v2895_v19 = vpack.c.bf16 %v2851_v48, %v2849_v61 }
 0x34f   : > { %v2896_v39 = vpack.c.bf16 %v2852_v52, %v2850_v29  ;;  %v2754_v20 = vpop.f32.mrb[104].mxu1 }
 0x350   : > { %v2755_v54 = vadd.f32 %v2754_v20, %v5751_v7  ;;  %v2756_v15 = vpop.f32.mrb[105].mxu1 }
 0x351   : > { %v2757_v56 = vadd.f32 %v2756_v15, %v5755_v25  ;;  %v2758_v26 = vpop.f32.mrb[106].mxu1  ;;  %3148 = vmatprep.mubr.bf16.mxu1 %v2896_v39 }
 0x352   : > { %v2759_v60 = vadd.f32 %v2758_v26, %v5751_v7  ;;  %v2760_v57 = vpop.f32.mrb[107].mxu1  ;;  %3149 = vmatmul.mubr.bf16.gmra.mrb[164].mxu1 %v2895_v19  ;;  %v2853_v3 = vmax.f32 %v2755_v54, 0.0 }
 0x353   : > { %v2761_v30 = vadd.f32 %v2760_v57, %v5755_v25  ;;  %v2854_v18 = vmax.f32 %v2757_v56, 0.0 }
 0x354   : > { %v2855_v45 = vmax.f32 %v2759_v60, 0.0 }
 0x355   : > { %v2856_v31 = vmax.f32 %v2761_v30, 0.0 }
 0x356   : > { %v2897_v4 = vpack.c.bf16 %v2855_v45, %v2853_v3 }
 0x357   : > { %v2898_v35 = vpack.c.bf16 %v2856_v31, %v2854_v18  ;;  %v2764_v44 = vpop.f32.mrb[108].mxu1 }
 0x358   : > { %v2765_v8 = vadd.f32 %v2764_v44, %v5751_v7  ;;  %v2766_v47 = vpop.f32.mrb[109].mxu1 }
 0x359   : > { %v2767_v12 = vadd.f32 %v2766_v47, %v5755_v25  ;;  %v2768_v42 = vpop.f32.mrb[110].mxu1  ;;  %3156 = vmatprep.mubr.bf16.mxu1 %v2898_v35 }
 0x35a   : > { %v2769_v55 = vadd.f32 %v2768_v42, %v5751_v7  ;;  %v2770_v62 = vpop.f32.mrb[111].mxu1  ;;  %3157 = vmatmul.mubr.bf16.gmra.mrb[168].mxu1 %v2897_v4  ;;  %v2857_v58 = vmax.f32 %v2765_v8, 0.0 }
 0x35b   : > { %v2771_v14 = vadd.f32 %v2770_v62, %v5755_v25  ;;  %v2858_v63 = vmax.f32 %v2767_v12, 0.0 }
 0x35c   : > { %v2859_v46 = vmax.f32 %v2769_v55, 0.0 }
 0x35d   : > { %v2860_v37 = vmax.f32 %v2771_v14, 0.0 }
 0x35e   : > { %v2899_v27 = vpack.c.bf16 %v2859_v46, %v2857_v58  ;;  %v5825_v46 = vld [vmem:[%s5905_s6] ss:$0 sm:$0xff] }
 0x35f   : > { %v2900_v6 = vpack.c.bf16 %v2860_v37, %v2858_v63  ;;  %v2774_v23 = vpop.f32.mrb[112].mxu1 }
 0x360   : > { %v2775_v32 = vadd.f32 %v2774_v23, %v5751_v7  ;;  %v2776_v59 = vpop.f32.mrb[113].mxu1 }
 0x361   : > { %v2777_v34 = vadd.f32 %v2776_v59, %v5755_v25  ;;  %v2778_v21 = vpop.f32.mrb[114].mxu1  ;;  %3164 = vmatprep.mubr.bf16.mxu1 %v2900_v6 }
 0x362   : > { %v2779_v5 = vadd.f32 %v2778_v21, %v5751_v7  ;;  %v2780_v50 = vpop.f32.mrb[115].mxu1  ;;  %3165 = vmatmul.mubr.bf16.gmra.mrb[172].mxu1 %v2899_v27  ;;  %v2861_v36 = vmax.f32 %v2775_v32, 0.0 }
 0x363   : > { %v2781_v16 = vadd.f32 %v2780_v50, %v5755_v25  ;;  %v2862_v38 = vmax.f32 %v2777_v34, 0.0 }
 0x364   : > { %v2863_v49 = vmax.f32 %v2779_v5, 0.0 }
 0x365   : > { %v2864_v22 = vmax.f32 %v2781_v16, 0.0 }
 0x366   : > { %v2901_v10 = vpack.c.bf16 %v2863_v49, %v2861_v36 }
 0x367   : > { %v2902_v2 = vpack.c.bf16 %v2864_v22, %v2862_v38  ;;  %v2784_v0 = vpop.f32.mrb[116].mxu1 }
 0x368   : > { %v2785_v9 = vadd.f32 %v2784_v0, %v5751_v7  ;;  %v2786_v53 = vpop.f32.mrb[117].mxu1 }
 0x369   : > { %v2787_v33 = vadd.f32 %v2786_v53, %v5755_v25  ;;  %v2788_v40 = vpop.f32.mrb[118].mxu1  ;;  %3172 = vmatprep.mubr.bf16.mxu1 %v2902_v2 }
 0x36a   : > { %v2789_v24 = vadd.f32 %v2788_v40, %v5751_v7  ;;  %v2790_v11 = vpop.f32.mrb[119].mxu1  ;;  %3173 = vmatmul.mubr.bf16.gmra.mrb[176].mxu1 %v2901_v10  ;;  %v2865_v1 = vmax.f32 %v2785_v9, 0.0 }
 0x36b   : > { %v2791_v43 = vadd.f32 %v2790_v11, %v5755_v25  ;;  %v2866_v51 = vmax.f32 %v2787_v33, 0.0 }
 0x36c   : > { %v2867_v17 = vmax.f32 %v2789_v24, 0.0 }
 0x36d   : > { %v2868_v13 = vmax.f32 %v2791_v43, 0.0 }
 0x36e   : > { %v2903_v28 = vpack.c.bf16 %v2867_v17, %v2865_v1 }
 0x36f   : > { %v2904_v41 = vpack.c.bf16 %v2868_v13, %v2866_v51  ;;  %v2794_v61 = vpop.f32.mrb[120].mxu1 }
 0x370   : > { %v2795_v48 = vadd.f32 %v2794_v61, %v5751_v7  ;;  %v2796_v29 = vpop.f32.mrb[121].mxu1 }
 0x371   : > { %v2797_v52 = vadd.f32 %v2796_v29, %v5755_v25  ;;  %v2798_v19 = vpop.f32.mrb[122].mxu1  ;;  %3180 = vmatprep.mubr.bf16.mxu1 %v2904_v41 }
 0x372   : > { %v2799_v39 = vadd.f32 %v2798_v19, %v5751_v7  ;;  %v2800_v20 = vpop.f32.mrb[123].mxu1  ;;  %3181 = vmatmul.mubr.bf16.gmra.mrb[180].mxu1 %v2903_v28  ;;  %v2869_v15 = vmax.f32 %v2795_v48, 0.0 }
 0x373   : > { %v2801_v54 = vadd.f32 %v2800_v20, %v5755_v25  ;;  %v2870_v26 = vmax.f32 %v2797_v52, 0.0 }
 0x374   : > { %v2871_v56 = vmax.f32 %v2799_v39, 0.0 }
 0x375   : > { %v2872_v60 = vmax.f32 %v2801_v54, 0.0 }
 0x376   : > { %v2905_v57 = vpack.c.bf16 %v2871_v56, %v2869_v15 }
 0x377   : > { %v2906_v30 = vpack.c.bf16 %v2872_v60, %v2870_v26  ;;  %v2804_v3 = vpop.f32.mrb[124].mxu1 }
 0x378   : > { %v2805_v45 = vadd.f32 %v2804_v3, %v5751_v7  ;;  %v2806_v18 = vpop.f32.mrb[125].mxu1 }
 0x379   : > { %v2807_v31 = vadd.f32 %v2806_v18, %v5755_v25  ;;  %v2808_v4 = vpop.f32.mrb[126].mxu1  ;;  %3188 = vmatprep.mubr.bf16.mxu1 %v2906_v30 }
 0x37a   : > { %v2809_v35 = vadd.f32 %v2808_v4, %v5751_v7  ;;  %v2810_v44 = vpop.f32.mrb[127].mxu1  ;;  %3189 = vmatmul.mubr.bf16.gmra.mrb[184].mxu1 %v2905_v57  ;;  %v2873_v47 = vmax.f32 %v2805_v45, 0.0 }
 0x37b   : > { %v2811_v8 = vadd.f32 %v2810_v44, %v5755_v25  ;;  %v2874_v42 = vmax.f32 %v2807_v31, 0.0 }
 0x37c   : > { %v2875_v12 = vmax.f32 %v2809_v35, 0.0 }
 0x37d   : > { %v2876_v55 = vmax.f32 %v2811_v8, 0.0 }
 0x37e   : > { %v2907_v62 = vpack.c.bf16 %v2875_v12, %v2873_v47 }
 0x37f   : > { %v2908_v14 = vpack.c.bf16 %v2876_v55, %v2874_v42 }
 0x381   : > { %3196 = vmatprep.mubr.bf16.mxu1 %v2908_v14 }
 0x382   : > { %3197 = vmatmul.mubr.bf16.gmra.mrb[188].mxu1 %v2907_v62 }
 0x3dd   : > { %v3481_v58 = vpop.f32.mrb[128].mxu1 }
 0x3de   : > { %v3482_v7 = vpop.f32.mrb[129].mxu1 }
 0x3df   : > { %v3483_v63 = vadd.f32 %v3482_v7, %v3481_v58  ;;  %v3484_v37 = vpop.f32.mrb[130].mxu1 }
 0x3e0   : > { %v3485_v25 = vpop.f32.mrb[131].mxu1 }
 0x3e1   : > { %v3079_v27 = vadd.f32 %v3483_v63, %v5825_v46  ;;  %v3486_v6 = vadd.f32 %v3485_v25, %v3484_v37 }
 0x3e3   : > { %3205 = vst [vmem:[%s5830_s10] sm:$0xff] %v3079_v27  ;;  %v3082_v23 = vadd.f32 %v3486_v6, %v5825_v46 }
 0x3e5   : > { %3206 = vst [vmem:[%s5830_s10 + $0x8] sm:$0xff] %v3082_v23  ;;  %v3487_v32 = vpop.f32.mrb[132].mxu1 }
 0x3e6   : > { %v3488_v59 = vpop.f32.mrb[133].mxu1 }
 0x3e7   : > { %v3489_v34 = vadd.f32 %v3488_v59, %v3487_v32  ;;  %v3490_v21 = vpop.f32.mrb[134].mxu1 }
 0x3e8   : > { %v3491_v5 = vpop.f32.mrb[135].mxu1 }
 0x3e9   : > { %v3087_v50 = vadd.f32 %v3489_v34, %v5825_v46  ;;  %v3492_v16 = vadd.f32 %v3491_v5, %v3490_v21 }
 0x3eb   : > { %3207 = vst [vmem:[%s5830_s10 + $0x10] sm:$0xff] %v3087_v50  ;;  %v3090_v36 = vadd.f32 %v3492_v16, %v5825_v46 }
 0x3ed   : > { %3208 = vst [vmem:[%s5830_s10 + $0x18] sm:$0xff] %v3090_v36  ;;  %v3493_v49 = vpop.f32.mrb[136].mxu1 }
 0x3ee   : > { %v3494_v38 = vpop.f32.mrb[137].mxu1 }
 0x3ef   : > { %v3495_v22 = vadd.f32 %v3494_v38, %v3493_v49  ;;  %v3496_v10 = vpop.f32.mrb[138].mxu1 }
 0x3f0   : > { %v3497_v2 = vpop.f32.mrb[139].mxu1 }
 0x3f1   : > { %v3095_v0 = vadd.f32 %v3495_v22, %v5825_v46  ;;  %v3498_v9 = vadd.f32 %v3497_v2, %v3496_v10 }
 0x3f3   : > { %3209 = vst [vmem:[%s5830_s10 + $0x20] sm:$0xff] %v3095_v0  ;;  %v3098_v53 = vadd.f32 %v3498_v9, %v5825_v46 }
 0x3f5   : > { %3210 = vst [vmem:[%s5830_s10 + $0x28] sm:$0xff] %v3098_v53  ;;  %v3499_v33 = vpop.f32.mrb[140].mxu1 }
 0x3f6   : > { %v3500_v40 = vpop.f32.mrb[141].mxu1 }
 0x3f7   : > { %v3501_v24 = vadd.f32 %v3500_v40, %v3499_v33  ;;  %v3502_v11 = vpop.f32.mrb[142].mxu1 }
 0x3f8   : > { %v3503_v43 = vpop.f32.mrb[143].mxu1 }
 0x3f9   : > { %v3103_v1 = vadd.f32 %v3501_v24, %v5825_v46  ;;  %v3504_v17 = vadd.f32 %v3503_v43, %v3502_v11 }
 0x3fb   : > { %3211 = vst [vmem:[%s5830_s10 + $0x30] sm:$0xff] %v3103_v1  ;;  %v3106_v51 = vadd.f32 %v3504_v17, %v5825_v46 }
 0x3fd   : > { %3212 = vst [vmem:[%s5830_s10 + $0x38] sm:$0xff] %v3106_v51  ;;  %v3505_v13 = vpop.f32.mrb[144].mxu1 }
 0x3fe   : > { %v3506_v28 = vpop.f32.mrb[145].mxu1 }
 0x3ff   : > { %v3507_v41 = vadd.f32 %v3506_v28, %v3505_v13  ;;  %v3508_v61 = vpop.f32.mrb[146].mxu1 }
 0x400   : > { %v3509_v48 = vpop.f32.mrb[147].mxu1 }
 0x401   : > { %v3111_v29 = vadd.f32 %v3507_v41, %v5825_v46  ;;  %v3510_v52 = vadd.f32 %v3509_v48, %v3508_v61 }
 0x403   : > { %3213 = vst [vmem:[%s5830_s10 + $0x40] sm:$0xff] %v3111_v29  ;;  %v3114_v19 = vadd.f32 %v3510_v52, %v5825_v46 }
 0x405   : > { %3214 = vst [vmem:[%s5830_s10 + $0x48] sm:$0xff] %v3114_v19  ;;  %v3511_v39 = vpop.f32.mrb[148].mxu1 }
 0x406   : > { %v3512_v20 = vpop.f32.mrb[149].mxu1 }
 0x407   : > { %v3513_v54 = vadd.f32 %v3512_v20, %v3511_v39  ;;  %v3514_v15 = vpop.f32.mrb[150].mxu1 }
 0x408   : > { %v3515_v56 = vpop.f32.mrb[151].mxu1 }
 0x409   : > { %v3119_v26 = vadd.f32 %v3513_v54, %v5825_v46  ;;  %v3516_v60 = vadd.f32 %v3515_v56, %v3514_v15 }
 0x40b   : > { %3215 = vst [vmem:[%s5830_s10 + $0x50] sm:$0xff] %v3119_v26  ;;  %v3122_v57 = vadd.f32 %v3516_v60, %v5825_v46 }
 0x40d   : > { %3216 = vst [vmem:[%s5830_s10 + $0x58] sm:$0xff] %v3122_v57  ;;  %v3517_v30 = vpop.f32.mrb[152].mxu1 }
 0x40e   : > { %v3518_v3 = vpop.f32.mrb[153].mxu1 }
 0x40f   : > { %v3519_v45 = vadd.f32 %v3518_v3, %v3517_v30  ;;  %v3520_v18 = vpop.f32.mrb[154].mxu1 }
 0x410   : > { %v3521_v31 = vpop.f32.mrb[155].mxu1 }
 0x411   : > { %v3127_v4 = vadd.f32 %v3519_v45, %v5825_v46  ;;  %v3522_v35 = vadd.f32 %v3521_v31, %v3520_v18 }
 0x413   : > { %3217 = vst [vmem:[%s5830_s10 + $0x60] sm:$0xff] %v3127_v4  ;;  %v3130_v44 = vadd.f32 %v3522_v35, %v5825_v46 }
 0x415   : > { %3218 = vst [vmem:[%s5830_s10 + $0x68] sm:$0xff] %v3130_v44  ;;  %v3523_v8 = vpop.f32.mrb[156].mxu1 }
 0x416   : > { %v3524_v47 = vpop.f32.mrb[157].mxu1 }
 0x417   : > { %v3525_v12 = vadd.f32 %v3524_v47, %v3523_v8  ;;  %v3526_v42 = vpop.f32.mrb[158].mxu1 }
 0x418   : > { %v3527_v55 = vpop.f32.mrb[159].mxu1 }
 0x419   : > { %v3135_v62 = vadd.f32 %v3525_v12, %v5825_v46  ;;  %v3528_v14 = vadd.f32 %v3527_v55, %v3526_v42 }
 0x41b   : > { %3219 = vst [vmem:[%s5830_s10 + $0x70] sm:$0xff] %v3135_v62  ;;  %v3138_v58 = vadd.f32 %v3528_v14, %v5825_v46 }
 0x41d   : > { %3220 = vst [vmem:[%s5830_s10 + $0x78] sm:$0xff] %v3138_v58  ;;  %v3529_v7 = vpop.f32.mrb[160].mxu1 }
 0x41e   : > { %v3530_v63 = vpop.f32.mrb[161].mxu1 }
 0x41f   : > { %v3531_v37 = vadd.f32 %v3530_v63, %v3529_v7  ;;  %v3532_v25 = vpop.f32.mrb[162].mxu1 }
 0x420   : > { %v3533_v27 = vpop.f32.mrb[163].mxu1 }
 0x421   : > { %v3143_v6 = vadd.f32 %v3531_v37, %v5825_v46  ;;  %v3534_v23 = vadd.f32 %v3533_v27, %v3532_v25 }
 0x423   : > { %3221 = vst [vmem:[%s5830_s10 + $0x80] sm:$0xff] %v3143_v6  ;;  %v3146_v32 = vadd.f32 %v3534_v23, %v5825_v46 }
 0x425   : > { %3222 = vst [vmem:[%s5830_s10 + $0x88] sm:$0xff] %v3146_v32  ;;  %v3535_v59 = vpop.f32.mrb[164].mxu1 }
 0x426   : > { %v3536_v34 = vpop.f32.mrb[165].mxu1 }
 0x427   : > { %v3537_v21 = vadd.f32 %v3536_v34, %v3535_v59  ;;  %v3538_v5 = vpop.f32.mrb[166].mxu1 }
 0x428   : > { %v3539_v50 = vpop.f32.mrb[167].mxu1 }
 0x429   : > { %v3151_v16 = vadd.f32 %v3537_v21, %v5825_v46  ;;  %v3540_v36 = vadd.f32 %v3539_v50, %v3538_v5 }
 0x42b   : > { %3223 = vst [vmem:[%s5830_s10 + $0x90] sm:$0xff] %v3151_v16  ;;  %v3154_v49 = vadd.f32 %v3540_v36, %v5825_v46 }
 0x42d   : > { %3224 = vst [vmem:[%s5830_s10 + $0x98] sm:$0xff] %v3154_v49  ;;  %v3541_v38 = vpop.f32.mrb[168].mxu1 }
 0x42e   : > { %v3542_v22 = vpop.f32.mrb[169].mxu1 }
 0x42f   : > { %v3543_v10 = vadd.f32 %v3542_v22, %v3541_v38  ;;  %v3544_v2 = vpop.f32.mrb[170].mxu1 }
 0x430   : > { %v3545_v0 = vpop.f32.mrb[171].mxu1 }
 0x431   : > { %v3159_v9 = vadd.f32 %v3543_v10, %v5825_v46  ;;  %v3546_v53 = vadd.f32 %v3545_v0, %v3544_v2 }
 0x433   : > { %3225 = vst [vmem:[%s5830_s10 + $0xa0] sm:$0xff] %v3159_v9  ;;  %v3162_v33 = vadd.f32 %v3546_v53, %v5825_v46 }
 0x435   : > { %3226 = vst [vmem:[%s5830_s10 + $0xa8] sm:$0xff] %v3162_v33  ;;  %v3547_v40 = vpop.f32.mrb[172].mxu1 }
 0x436   : > { %v3548_v24 = vpop.f32.mrb[173].mxu1 }
 0x437   : > { %v3549_v11 = vadd.f32 %v3548_v24, %v3547_v40  ;;  %v3550_v43 = vpop.f32.mrb[174].mxu1 }
 0x438   : > { %v3551_v1 = vpop.f32.mrb[175].mxu1 }
 0x439   : > { %v3167_v17 = vadd.f32 %v3549_v11, %v5825_v46  ;;  %v3552_v51 = vadd.f32 %v3551_v1, %v3550_v43 }
 0x43b   : > { %3227 = vst [vmem:[%s5830_s10 + $0xb0] sm:$0xff] %v3167_v17  ;;  %v3170_v13 = vadd.f32 %v3552_v51, %v5825_v46 }
 0x43d   : > { %3228 = vst [vmem:[%s5830_s10 + $0xb8] sm:$0xff] %v3170_v13  ;;  %v3553_v28 = vpop.f32.mrb[176].mxu1 }
 0x43e   : > { %v3554_v41 = vpop.f32.mrb[177].mxu1 }
 0x43f   : > { %v3555_v61 = vadd.f32 %v3554_v41, %v3553_v28  ;;  %v3556_v48 = vpop.f32.mrb[178].mxu1 }
 0x440   : > { %v3557_v29 = vpop.f32.mrb[179].mxu1 }
 0x441   : > { %v3175_v52 = vadd.f32 %v3555_v61, %v5825_v46  ;;  %v3558_v19 = vadd.f32 %v3557_v29, %v3556_v48 }
 0x443   : > { %3229 = vst [vmem:[%s5830_s10 + $0xc0] sm:$0xff] %v3175_v52  ;;  %v3178_v39 = vadd.f32 %v3558_v19, %v5825_v46 }
 0x445   : > { %3230 = vst [vmem:[%s5830_s10 + $0xc8] sm:$0xff] %v3178_v39  ;;  %v3559_v20 = vpop.f32.mrb[180].mxu1 }
 0x446   : > { %v3560_v54 = vpop.f32.mrb[181].mxu1 }
 0x447   : > { %v3561_v15 = vadd.f32 %v3560_v54, %v3559_v20  ;;  %v3562_v56 = vpop.f32.mrb[182].mxu1 }
 0x448   : > { %v3563_v26 = vpop.f32.mrb[183].mxu1 }
 0x449   : > { %v3183_v60 = vadd.f32 %v3561_v15, %v5825_v46  ;;  %v3564_v57 = vadd.f32 %v3563_v26, %v3562_v56 }
 0x44b   : > { %3231 = vst [vmem:[%s5830_s10 + $0xd0] sm:$0xff] %v3183_v60  ;;  %v3186_v30 = vadd.f32 %v3564_v57, %v5825_v46 }
 0x44d   : > { %3232 = vst [vmem:[%s5830_s10 + $0xd8] sm:$0xff] %v3186_v30  ;;  %v3565_v3 = vpop.f32.mrb[184].mxu1 }
 0x44e   : > { %v3566_v45 = vpop.f32.mrb[185].mxu1 }
 0x44f   : > { %v3567_v18 = vadd.f32 %v3566_v45, %v3565_v3  ;;  %v3568_v31 = vpop.f32.mrb[186].mxu1 }
 0x450   : > { %v3569_v4 = vpop.f32.mrb[187].mxu1 }
 0x451   : > { %v3191_v35 = vadd.f32 %v3567_v18, %v5825_v46  ;;  %v3570_v44 = vadd.f32 %v3569_v4, %v3568_v31 }
 0x453   : > { %3233 = vst [vmem:[%s5830_s10 + $0xe0] sm:$0xff] %v3191_v35  ;;  %v3194_v8 = vadd.f32 %v3570_v44, %v5825_v46 }
 0x455   : > { %3234 = vst [vmem:[%s5830_s10 + $0xe8] sm:$0xff] %v3194_v8  ;;  %v3571_v47 = vpop.f32.mrb[188].mxu1 }
 0x456   : > { %v3572_v12 = vpop.f32.mrb[189].mxu1 }
 0x457   : > { %v3573_v42 = vadd.f32 %v3572_v12, %v3571_v47  ;;  %v3574_v55 = vpop.f32.mrb[190].mxu1 }
 0x458   : > { %v3575_v62 = vpop.f32.mrb[191].mxu1 }
 0x459   : > { %v3199_v14 = vadd.f32 %v3573_v42, %v5825_v46  ;;  %v3576_v58 = vadd.f32 %v3575_v62, %v3574_v55 }
 0x45b   : > { %3235 = vst [vmem:[%s5830_s10 + $0xf0] sm:$0xff] %v3199_v14  ;;  %v3202_v7 = vadd.f32 %v3576_v58, %v5825_v46 }
 0x45d   : > { %3236 = vst [vmem:[%s5830_s10 + $0xf8] sm:$0xff] %v3202_v7 }
 0x45e PF: > { %s17_s24 = sadd.s32 1, %s4081_s24  }
 0x45f   : > { %p14_p4 = scmp.ge.s32.totalorder %s17_s24, 4  }
 0x461   :  { %16 = sbr.rel (!%p14_p4) target bundleno = 1 (0x1), region = 78 }

</bundles_post_ra>
